<compile_context>
chip_gen: v5e
topology: v5e:2x2
jax: 0.10.0
libtpu: 0.0.40
codegen_flags: <defaults>
</compile_context>

<pallas_src>
import math
import functools

import jax
import jax.numpy as jnp
from jax.experimental import pallas as pl
from jax.experimental.pallas import tpu as pltpu


C_PAD = 128  # lane-dense padded classifier width (real classes sliced in wrapper)


# ----------------------------------------------------------------------------
# Fused Pallas kernel: embedding + pos-enc + all encoder layers + classifier
# ----------------------------------------------------------------------------

def fused_transformer_kernel(
    ids_ref, mask_ref, pe_ref, emb_ref,
    wq_ref, bq_ref, wk_ref, bk_ref, wv_ref, bv_ref,
    wo_ref, bo_ref, ln1w_ref, ln1b_ref,
    w1_ref, b1_ref, w2_ref, b2_ref, ln2w_ref, ln2b_ref,
    fcw_ref, fcb_ref,
    out_ref,
    *, nlayers, nhead, batch, seq, ntok_pad):
    """ids_ref: [B*S, 1] int32 batch-major token ids.
    emb_ref:  [NTOK_PAD, D] bf16 embedding table (sqrt(D) pre-folded).
    pe_ref:   [S, D] f32 positional-encoding table.
    Weight refs carry a leading layer axis L; matmul weights are bf16,
    biases / layernorm params are f32.  out_ref: [B*S, C_PAD] f32.
    """
    BS = batch * seq
    D = pe_ref.shape[-1]
    hd = D // nhead

    # --- embedding lookup as one-hot matmul on the MXU (no gather) ---
    ids = ids_ref[...]                                               # [BS, 1] int32
    iota = jax.lax.broadcasted_iota(jnp.int32, (BS, ntok_pad), 1)
    onehot = (ids == iota).astype(jnp.bfloat16)                      # [BS, NTOK_PAD]
    x = jnp.dot(onehot, emb_ref[...],
                preferred_element_type=jnp.float32)                  # [BS, D] f32

    # --- positional encoding (static tile over batch), dropout = identity ---
    pe = pe_ref[...]                                                 # [S, D]
    x = x + jnp.concatenate([pe] * batch, axis=0)                    # [BS, D]

    mask = mask_ref[...]                                             # [S, S] additive

    def layernorm(y, w, b):
        mu = jnp.mean(y, axis=-1, keepdims=True)
        var = jnp.mean((y - mu) ** 2, axis=-1, keepdims=True)
        return (y - mu) * jax.lax.rsqrt(var + 1e-5) * w + b

    for l in range(nlayers):                                         # static unroll
        xb = x.astype(jnp.bfloat16)

        # full-D projections (attention scale pre-folded into wq / bq)
        q = jnp.dot(xb, wq_ref[l], preferred_element_type=jnp.float32) + bq_ref[l]
        k = jnp.dot(xb, wk_ref[l], preferred_element_type=jnp.float32) + bk_ref[l]
        v = jnp.dot(xb, wv_ref[l], preferred_element_type=jnp.float32) + bv_ref[l]

        # attention: batched over B inside each head (static head loop, H small)
        ctx_heads = []
        for h in range(nhead):
            lo = h * hd
            qh = q[:, lo:lo + hd].reshape(batch, seq, hd).astype(jnp.bfloat16)
            kh = k[:, lo:lo + hd].reshape(batch, seq, hd).astype(jnp.bfloat16)
            vh = v[:, lo:lo + hd].reshape(batch, seq, hd).astype(jnp.bfloat16)
            s = jnp.einsum('bqd,bkd->bqk', qh, kh,
                           preferred_element_type=jnp.float32) + mask    # [B,S,S]
            s = s - jnp.max(s, axis=-1, keepdims=True)
            p = jnp.exp(s)
            p = p * pl.reciprocal(jnp.sum(p, axis=-1, keepdims=True), approx=True)
            ctx = jnp.einsum('bqk,bkd->bqd', p.astype(jnp.bfloat16), vh,
                             preferred_element_type=jnp.float32)         # [B,S,hd]
            ctx_heads.append(ctx.reshape(BS, hd))
        ctx = jnp.concatenate(ctx_heads, axis=-1)                        # [BS, D]

        # single [D,D] output projection (no per-head accumulation)
        attn = jnp.dot(ctx.astype(jnp.bfloat16), wo_ref[l],
                       preferred_element_type=jnp.float32) + bo_ref[l]

        # post-norm: x = norm1(x + sa(x)); x = norm2(x + ff(x))
        x = layernorm(x + attn, ln1w_ref[l], ln1b_ref[l])

        h1 = jnp.dot(x.astype(jnp.bfloat16), w1_ref[l],
                     preferred_element_type=jnp.float32) + b1_ref[l]
        h1 = jnp.maximum(h1, 0.0)                                        # ReLU, f32
        ff = jnp.dot(h1.astype(jnp.bfloat16), w2_ref[l],
                     preferred_element_type=jnp.float32) + b2_ref[l]
        x = layernorm(x + ff, ln2w_ref[l], ln2b_ref[l])

    # classifier head, lane-dense (padded to C_PAD) output
    out_ref[...] = jnp.dot(x.astype(jnp.bfloat16), fcw_ref[...],
                           preferred_element_type=jnp.float32) + fcb_ref[...]


def fused_forward(ids_bm, mask, pe, p, *, nlayers, nhead, batch, seq):
    """ids_bm: [B*S, 1] int32 batch-major ids -> [B*S, C_PAD] logits."""
    BS = batch * seq
    D = pe.shape[-1]
    L = nlayers
    Dh = p["w1"].shape[-1]
    ntok_pad = p["emb"].shape[0]

    def full(shape):
        nz = len(shape)
        return pl.BlockSpec(shape, lambda i, _nz=nz: (0,) * _nz)

    kernel = functools.partial(fused_transformer_kernel,
                               nlayers=nlayers, nhead=nhead,
                               batch=batch, seq=seq, ntok_pad=ntok_pad)

    in_specs = [
        full((BS, 1)),                       # token ids (batch-major)
        full((seq, seq)),                    # additive mask
        full((seq, D)),                      # positional encoding table
        full((ntok_pad, D)),                 # embedding table (padded, bf16)
        full((L, D, D)), full((L, 1, D)),    # wq, bq
        full((L, D, D)), full((L, 1, D)),    # wk, bk
        full((L, D, D)), full((L, 1, D)),    # wv, bv
        full((L, D, D)), full((L, 1, D)),    # wo, bo
        full((L, 1, D)), full((L, 1, D)),    # ln1 w, b
        full((L, D, Dh)), full((L, 1, Dh)),  # ffn linear1
        full((L, Dh, D)), full((L, 1, D)),   # ffn linear2
        full((L, 1, D)), full((L, 1, D)),    # ln2 w, b
        full((D, C_PAD)), full((1, C_PAD)),  # fc (padded)
    ]

    return pl.pallas_call(
        kernel,
        out_shape=jax.ShapeDtypeStruct((BS, C_PAD), jnp.float32),
        grid_spec=pltpu.PrefetchScalarGridSpec(
            num_scalar_prefetch=0,
            grid=(1,),                       # whole model in one step
            in_specs=in_specs,
            out_specs=full((BS, C_PAD)),
        ),
        compiler_params=pltpu.CompilerParams(
            dimension_semantics=("arbitrary",)),
    )(ids_bm, mask, pe, p["emb"],
      p["wq"], p["bq"], p["wk"], p["bk"], p["wv"], p["bv"],
      p["wo"], p["bo"], p["ln1w"], p["ln1b"],
      p["w1"], p["b1"], p["w2"], p["b2"], p["ln2w"], p["ln2b"],
      p["fc_w"], p["fc_b"])


# ----------------------------------------------------------------------------
# Model glue (layout plumbing only -- all math happens in the kernel)
# ----------------------------------------------------------------------------

def positional_encoding(max_len, d_model):
    position = jnp.arange(max_len, dtype=jnp.float32)[:, None]
    div_term = jnp.exp(
        jnp.arange(0, d_model, 2, dtype=jnp.float32) * (-math.log(10000.0) / d_model)
    )
    ang = position * div_term                            # [S, D/2]
    pe = jnp.zeros((max_len, d_model), jnp.float32)
    pe = pe.at[:, 0::2].set(jnp.sin(ang))
    pe = pe.at[:, 1::2].set(jnp.cos(ang))
    return pe                                            # [max_len, D]


def transformer_forward(params, src, src_mask, *, nhead, nlayers, num_classes):
    """src: [S, B] int32, src_mask: [S, S] f32 -> [S, B, num_classes]."""
    S, B = src.shape
    pe = params["pe"][:S]                                # [S, D]

    # batch-major flatten of the tiny int id tensor (only wrapper-side op)
    ids_bm = jnp.transpose(src, (1, 0)).reshape(B * S, 1).astype(jnp.int32)

    out = fused_forward(ids_bm, src_mask, pe, params,
                        nlayers=nlayers, nhead=nhead, batch=B, seq=S)
    out = out.reshape(B, S, C_PAD)[:, :, :num_classes]   # drop lane padding
    return jnp.transpose(out, (1, 0, 2))                 # back to [S, B, C]


# ----------------------------------------------------------------------------
# Deterministic parameter init (shapes follow the PyTorch module __init__)
# ----------------------------------------------------------------------------

def init_params(key, ntoken, d_model, nhead, d_hid, nlayers, num_classes,
                max_len=64):
    hd = d_model // nhead
    scale = 1.0 / math.sqrt(hd)            # attention scale, folded into wq/bq
    ntok_pad = max(128, ((ntoken + 127) // 128) * 128)
    keys = jax.random.split(key, 2 + nlayers)

    def uniform(k, shape, bound):
        return jax.random.uniform(k, shape, jnp.float32, -bound, bound)

    # encoder.weight U(-0.1, 0.1); sqrt(d_model) scale folded in; padded rows = 0
    emb = uniform(keys[0], (ntoken, d_model), 0.1) * math.sqrt(d_model)
    emb = jnp.pad(emb, ((0, ntok_pad - ntoken), (0, 0)))
    fc_w = uniform(keys[1], (d_model, num_classes), 0.1)      # fc.weight ([in,out])
    fc_w = jnp.pad(fc_w, ((0, 0), (0, C_PAD - num_classes)))  # lane-dense pad
    fc_b = jnp.zeros((1, C_PAD), jnp.float32)                 # fc.bias zeroed

    # TODO(synk): init distributions approximate (not bit-exact) PyTorch defaults.
    names = ["wq", "bq", "wk", "bk", "wv", "bv", "wo", "bo",
             "ln1w", "ln1b", "w1", "b1", "w2", "b2", "ln2w", "ln2b"]
    stacks = {n: [] for n in names}
    bnd_d = 1.0 / math.sqrt(d_model)
    bnd_h = 1.0 / math.sqrt(d_hid)
    for l in range(nlayers):
        ks = jax.random.split(keys[2 + l], 11)
        stacks["wq"].append(uniform(ks[0], (d_model, d_model), bnd_d) * scale)
        stacks["wk"].append(uniform(ks[1], (d_model, d_model), bnd_d))
        stacks["wv"].append(uniform(ks[2], (d_model, d_model), bnd_d))
        stacks["bq"].append(uniform(ks[3], (1, d_model), bnd_d) * scale)
        stacks["bk"].append(uniform(ks[4], (1, d_model), bnd_d))
        stacks["bv"].append(uniform(ks[5], (1, d_model), bnd_d))
        stacks["wo"].append(uniform(ks[6], (d_model, d_model), bnd_d))
        stacks["bo"].append(jnp.zeros((1, d_model), jnp.float32))
        stacks["ln1w"].append(jnp.ones((1, d_model), jnp.float32))
        stacks["ln1b"].append(jnp.zeros((1, d_model), jnp.float32))
        stacks["w1"].append(uniform(ks[7], (d_model, d_hid), bnd_d))
        stacks["b1"].append(uniform(ks[8], (1, d_hid), bnd_d))
        stacks["w2"].append(uniform(ks[9], (d_hid, d_model), bnd_h))
        stacks["b2"].append(uniform(ks[10], (1, d_model), bnd_h))
        stacks["ln2w"].append(jnp.ones((1, d_model), jnp.float32))
        stacks["ln2b"].append(jnp.zeros((1, d_model), jnp.float32))

    bf16_names = {"wq", "wk", "wv", "wo", "w1", "w2"}     # MXU operand weights
    params = {
        n: jnp.stack(stacks[n]).astype(jnp.bfloat16 if n in bf16_names
                                       else jnp.float32)
        for n in names
    }
    params.update({
        "emb": emb.astype(jnp.bfloat16),
        "pe": positional_encoding(max_len, d_model),
        "fc_w": fc_w.astype(jnp.bfloat16),
        "fc_b": fc_b,
    })
    return params


# ----------------------------------------------------------------------------
# Main
# ----------------------------------------------------------------------------

if __name__ == "__main__":
    ntoken, d_model, nhead, d_hid, nlayers, num_classes = 20, 32, 2, 64, 2, 10
    S, B = 8, 2

    key = jax.random.PRNGKey(0)
    pkey, dkey = jax.random.split(key)

    params = init_params(pkey, ntoken, d_model, nhead, d_hid, nlayers,
                         num_classes, max_len=64)

    src = jax.random.randint(dkey, (S, B), 0, ntoken, dtype=jnp.int32)
    # causal additive mask (0 on/below diagonal, large negative above)
    src_mask = jnp.where(jnp.triu(jnp.ones((S, S), jnp.float32), k=1) > 0,
                         -1e9, 0.0).astype(jnp.float32)

    out = transformer_forward(params, src, src_mask,
                              nhead=nhead, nlayers=nlayers,
                              num_classes=num_classes)
    out = jax.block_until_ready(out)

    assert out.shape == (S, B, num_classes), out.shape
    assert bool(jnp.all(jnp.isfinite(out)))
    print("KERNEL_OK")
</pallas_src>

<mosaic_0001>
module attributes {stable_mosaic.version = 11 : i64} {
  func.func @fused_transformer_kernel(%arg0: i32, %arg1: memref<16x1xi32, #tpu.memory_space<vmem>>, %arg2: memref<8x8xf32, #tpu.memory_space<vmem>>, %arg3: memref<8x32xf32, #tpu.memory_space<vmem>>, %arg4: memref<128x32xbf16, #tpu.memory_space<vmem>>, %arg5: memref<2x32x32xbf16, #tpu.memory_space<vmem>>, %arg6: memref<2x1x32xf32, #tpu.memory_space<vmem>>, %arg7: memref<2x32x32xbf16, #tpu.memory_space<vmem>>, %arg8: memref<2x1x32xf32, #tpu.memory_space<vmem>>, %arg9: memref<2x32x32xbf16, #tpu.memory_space<vmem>>, %arg10: memref<2x1x32xf32, #tpu.memory_space<vmem>>, %arg11: memref<2x32x32xbf16, #tpu.memory_space<vmem>>, %arg12: memref<2x1x32xf32, #tpu.memory_space<vmem>>, %arg13: memref<2x1x32xf32, #tpu.memory_space<vmem>>, %arg14: memref<2x1x32xf32, #tpu.memory_space<vmem>>, %arg15: memref<2x32x64xbf16, #tpu.memory_space<vmem>>, %arg16: memref<2x1x64xf32, #tpu.memory_space<vmem>>, %arg17: memref<2x64x32xbf16, #tpu.memory_space<vmem>>, %arg18: memref<2x1x32xf32, #tpu.memory_space<vmem>>, %arg19: memref<2x1x32xf32, #tpu.memory_space<vmem>>, %arg20: memref<2x1x32xf32, #tpu.memory_space<vmem>>, %arg21: memref<32x128xbf16, #tpu.memory_space<vmem>>, %arg22: memref<1x128xf32, #tpu.memory_space<vmem>>, %arg23: memref<16x128xf32, #tpu.memory_space<vmem>>) attributes {dimension_semantics = [#tpu.dimension_semantics<arbitrary>], iteration_bounds = array<i64: 1>, scalar_prefetch = 0 : i64, scratch_operands = 0 : i64, tpu.core_type = #tpu.core_type<tc>, window_params = [{pipeline_mode = #tpu.pipeline_mode<synchronous>, transform_indices = @transform_0, window_bounds = array<i64: 16, 1>}, {pipeline_mode = #tpu.pipeline_mode<synchronous>, transform_indices = @transform_1, window_bounds = array<i64: 8, 8>}, {pipeline_mode = #tpu.pipeline_mode<synchronous>, transform_indices = @transform_2, window_bounds = array<i64: 8, 32>}, {pipeline_mode = #tpu.pipeline_mode<synchronous>, transform_indices = @transform_3, window_bounds = array<i64: 128, 32>}, {pipeline_mode = #tpu.pipeline_mode<synchronous>, transform_indices = @transform_4, window_bounds = array<i64: 2, 32, 32>}, {pipeline_mode = #tpu.pipeline_mode<synchronous>, transform_indices = @transform_5, window_bounds = array<i64: 2, 1, 32>}, {pipeline_mode = #tpu.pipeline_mode<synchronous>, transform_indices = @transform_6, window_bounds = array<i64: 2, 32, 32>}, {pipeline_mode = #tpu.pipeline_mode<synchronous>, transform_indices = @transform_7, window_bounds = array<i64: 2, 1, 32>}, {pipeline_mode = #tpu.pipeline_mode<synchronous>, transform_indices = @transform_8, window_bounds = array<i64: 2, 32, 32>}, {pipeline_mode = #tpu.pipeline_mode<synchronous>, transform_indices = @transform_9, window_bounds = array<i64: 2, 1, 32>}, {pipeline_mode = #tpu.pipeline_mode<synchronous>, transform_indices = @transform_10, window_bounds = array<i64: 2, 32, 32>}, {pipeline_mode = #tpu.pipeline_mode<synchronous>, transform_indices = @transform_11, window_bounds = array<i64: 2, 1, 32>}, {pipeline_mode = #tpu.pipeline_mode<synchronous>, transform_indices = @transform_12, window_bounds = array<i64: 2, 1, 32>}, {pipeline_mode = #tpu.pipeline_mode<synchronous>, transform_indices = @transform_13, window_bounds = array<i64: 2, 1, 32>}, {pipeline_mode = #tpu.pipeline_mode<synchronous>, transform_indices = @transform_14, window_bounds = array<i64: 2, 32, 64>}, {pipeline_mode = #tpu.pipeline_mode<synchronous>, transform_indices = @transform_15, window_bounds = array<i64: 2, 1, 64>}, {pipeline_mode = #tpu.pipeline_mode<synchronous>, transform_indices = @transform_16, window_bounds = array<i64: 2, 64, 32>}, {pipeline_mode = #tpu.pipeline_mode<synchronous>, transform_indices = @transform_17, window_bounds = array<i64: 2, 1, 32>}, {pipeline_mode = #tpu.pipeline_mode<synchronous>, transform_indices = @transform_18, window_bounds = array<i64: 2, 1, 32>}, {pipeline_mode = #tpu.pipeline_mode<synchronous>, transform_indices = @transform_19, window_bounds = array<i64: 2, 1, 32>}, {pipeline_mode = #tpu.pipeline_mode<synchronous>, transform_indices = @transform_20, window_bounds = array<i64: 32, 128>}, {pipeline_mode = #tpu.pipeline_mode<synchronous>, transform_indices = @transform_21, window_bounds = array<i64: 1, 128>}, {pipeline_mode = #tpu.pipeline_mode<synchronous>, transform_indices = @transform_22, window_bounds = array<i64: 16, 128>}]} {
    %c0 = arith.constant 0 : index
    %c0_0 = arith.constant 0 : index
    %0 = vector.load %arg1[%c0, %c0_0] : memref<16x1xi32, #tpu.memory_space<vmem>>, vector<16x1xi32>
    %1 = tpu.iota {dimensions = array<i32: 1>} : vector<16x128xi32>
    %2 = vector.broadcast %0 : vector<16x1xi32> to vector<16x128xi32>
    %3 = arith.cmpi eq, %2, %1 : vector<16x128xi32>
    %4 = arith.extui %3 : vector<16x128xi1> to vector<16x128xi32>
    %5 = arith.sitofp %4 : vector<16x128xi32> to vector<16x128xf32>
    %6 = arith.truncf %5 : vector<16x128xf32> to vector<16x128xbf16>
    %c0_1 = arith.constant 0 : index
    %c0_2 = arith.constant 0 : index
    %7 = vector.load %arg4[%c0_1, %c0_2] : memref<128x32xbf16, #tpu.memory_space<vmem>>, vector<128x32xbf16>
    %cst = arith.constant dense<0.000000e+00> : vector<16x32xf32>
    %8 = tpu.matmul %6, %7, %cst {dimension_numbers = #tpu.dot_dimension_numbers<[1], [0], [0], [1], [0, 0, 1, 1], [], []>} : vector<16x128xbf16>, vector<128x32xbf16>, vector<16x32xf32> -> vector<16x32xf32>
    %c0_3 = arith.constant 0 : index
    %c0_4 = arith.constant 0 : index
    %9 = vector.load %arg3[%c0_3, %c0_4] : memref<8x32xf32, #tpu.memory_space<vmem>>, vector<8x32xf32>
    %10 = tpu.concatenate %9, %9 in 0 : vector<8x32xf32>, vector<8x32xf32> -> vector<16x32xf32>
    %11 = arith.addf %8, %10 : vector<16x32xf32>
    %c0_5 = arith.constant 0 : index
    %c0_6 = arith.constant 0 : index
    %12 = vector.load %arg2[%c0_5, %c0_6] : memref<8x8xf32, #tpu.memory_space<vmem>>, vector<8x8xf32>
    %13 = arith.truncf %11 : vector<16x32xf32> to vector<16x32xbf16>
    %c0_7 = arith.constant 0 : index
    %c0_8 = arith.constant 0 : index
    %c0_9 = arith.constant 0 : index
    %14 = vector.load %arg5[%c0_7, %c0_8, %c0_9] : memref<2x32x32xbf16, #tpu.memory_space<vmem>>, vector<1x32x32xbf16>
    %15 = vector.shape_cast %14 : vector<1x32x32xbf16> to vector<32x32xbf16>
    %cst_10 = arith.constant dense<0.000000e+00> : vector<16x32xf32>
    %16 = tpu.matmul %13, %15, %cst_10 {dimension_numbers = #tpu.dot_dimension_numbers<[1], [0], [0], [1], [0, 0, 1, 1], [], []>} : vector<16x32xbf16>, vector<32x32xbf16>, vector<16x32xf32> -> vector<16x32xf32>
    %c0_11 = arith.constant 0 : index
    %c0_12 = arith.constant 0 : index
    %c0_13 = arith.constant 0 : index
    %17 = vector.load %arg6[%c0_11, %c0_12, %c0_13] : memref<2x1x32xf32, #tpu.memory_space<vmem>>, vector<1x1x32xf32>
    %18 = vector.shape_cast %17 : vector<1x1x32xf32> to vector<1x32xf32>
    %19 = vector.broadcast %18 : vector<1x32xf32> to vector<16x32xf32>
    %20 = arith.addf %16, %19 : vector<16x32xf32>
    %c0_14 = arith.constant 0 : index
    %c0_15 = arith.constant 0 : index
    %c0_16 = arith.constant 0 : index
    %21 = vector.load %arg7[%c0_14, %c0_15, %c0_16] : memref<2x32x32xbf16, #tpu.memory_space<vmem>>, vector<1x32x32xbf16>
    %22 = vector.shape_cast %21 : vector<1x32x32xbf16> to vector<32x32xbf16>
    %cst_17 = arith.constant dense<0.000000e+00> : vector<16x32xf32>
    %23 = tpu.matmul %13, %22, %cst_17 {dimension_numbers = #tpu.dot_dimension_numbers<[1], [0], [0], [1], [0, 0, 1, 1], [], []>} : vector<16x32xbf16>, vector<32x32xbf16>, vector<16x32xf32> -> vector<16x32xf32>
    %c0_18 = arith.constant 0 : index
    %c0_19 = arith.constant 0 : index
    %c0_20 = arith.constant 0 : index
    %24 = vector.load %arg8[%c0_18, %c0_19, %c0_20] : memref<2x1x32xf32, #tpu.memory_space<vmem>>, vector<1x1x32xf32>
    %25 = vector.shape_cast %24 : vector<1x1x32xf32> to vector<1x32xf32>
    %26 = vector.broadcast %25 : vector<1x32xf32> to vector<16x32xf32>
    %27 = arith.addf %23, %26 : vector<16x32xf32>
    %c0_21 = arith.constant 0 : index
    %c0_22 = arith.constant 0 : index
    %c0_23 = arith.constant 0 : index
    %28 = vector.load %arg9[%c0_21, %c0_22, %c0_23] : memref<2x32x32xbf16, #tpu.memory_space<vmem>>, vector<1x32x32xbf16>
    %29 = vector.shape_cast %28 : vector<1x32x32xbf16> to vector<32x32xbf16>
    %cst_24 = arith.constant dense<0.000000e+00> : vector<16x32xf32>
    %30 = tpu.matmul %13, %29, %cst_24 {dimension_numbers = #tpu.dot_dimension_numbers<[1], [0], [0], [1], [0, 0, 1, 1], [], []>} : vector<16x32xbf16>, vector<32x32xbf16>, vector<16x32xf32> -> vector<16x32xf32>
    %c0_25 = arith.constant 0 : index
    %c0_26 = arith.constant 0 : index
    %c0_27 = arith.constant 0 : index
    %31 = vector.load %arg10[%c0_25, %c0_26, %c0_27] : memref<2x1x32xf32, #tpu.memory_space<vmem>>, vector<1x1x32xf32>
    %32 = vector.shape_cast %31 : vector<1x1x32xf32> to vector<1x32xf32>
    %33 = vector.broadcast %32 : vector<1x32xf32> to vector<16x32xf32>
    %34 = arith.addf %30, %33 : vector<16x32xf32>
    %35 = vector.extract_strided_slice %20 {offsets = [0, 0], sizes = [16, 16], strides = [1, 1]} : vector<16x32xf32> to vector<16x16xf32>
    %36 = vector.shape_cast %35 : vector<16x16xf32> to vector<2x8x16xf32>
    %37 = arith.truncf %36 : vector<2x8x16xf32> to vector<2x8x16xbf16>
    %38 = vector.extract_strided_slice %27 {offsets = [0, 0], sizes = [16, 16], strides = [1, 1]} : vector<16x32xf32> to vector<16x16xf32>
    %39 = vector.shape_cast %38 : vector<16x16xf32> to vector<2x8x16xf32>
    %40 = arith.truncf %39 : vector<2x8x16xf32> to vector<2x8x16xbf16>
    %41 = vector.extract_strided_slice %34 {offsets = [0, 0], sizes = [16, 16], strides = [1, 1]} : vector<16x32xf32> to vector<16x16xf32>
    %42 = vector.shape_cast %41 : vector<16x16xf32> to vector<2x8x16xf32>
    %43 = arith.truncf %42 : vector<2x8x16xf32> to vector<2x8x16xbf16>
    "tpu.trace_start"() <{level = 10 : i32, message = "bqd,bkd->bqk"}> : () -> ()
    %cst_28 = arith.constant dense<0.000000e+00> : vector<2x8x8xf32>
    %44 = tpu.matmul %37, %40, %cst_28 {dimension_numbers = #tpu.dot_dimension_numbers<[2], [2], [1], [1], [0, 0, 0, 1, 1, 1], [0], [0]>} : vector<2x8x16xbf16>, vector<2x8x16xbf16>, vector<2x8x8xf32> -> vector<2x8x8xf32>
    "tpu.trace_stop"() : () -> ()
    %45 = vector.shape_cast %12 : vector<8x8xf32> to vector<1x8x8xf32>
    %46 = vector.broadcast %45 : vector<1x8x8xf32> to vector<2x8x8xf32>
    %47 = arith.addf %44, %46 : vector<2x8x8xf32>
    %cst_29 = arith.constant dense<0xFF800000> : vector<2x8xf32>
    %48 = vector.multi_reduction <maximumf>, %47, %cst_29 [2] : vector<2x8x8xf32> to vector<2x8xf32>
    %49 = vector.shape_cast %48 : vector<2x8xf32> to vector<2x8x1xf32>
    %50 = vector.broadcast %49 : vector<2x8x1xf32> to vector<2x8x8xf32>
    %51 = arith.subf %47, %50 : vector<2x8x8xf32>
    %52 = math.exp %51 : vector<2x8x8xf32>
    %cst_30 = arith.constant dense<0.000000e+00> : vector<2x8xf32>
    %53 = vector.multi_reduction <add>, %52, %cst_30 [2] : vector<2x8x8xf32> to vector<2x8xf32>
    %54 = vector.shape_cast %53 : vector<2x8xf32> to vector<2x8x1xf32>
    %55 = tpu.reciprocal %54 {approx = true} : vector<2x8x1xf32> -> vector<2x8x1xf32>
    %56 = vector.broadcast %55 : vector<2x8x1xf32> to vector<2x8x8xf32>
    %57 = arith.mulf %52, %56 : vector<2x8x8xf32>
    %58 = arith.truncf %57 : vector<2x8x8xf32> to vector<2x8x8xbf16>
    "tpu.trace_start"() <{level = 10 : i32, message = "bqk,bkd->bqd"}> : () -> ()
    %cst_31 = arith.constant dense<0.000000e+00> : vector<2x8x16xf32>
    %59 = tpu.matmul %58, %43, %cst_31 {dimension_numbers = #tpu.dot_dimension_numbers<[2], [1], [1], [2], [0, 0, 0, 1, 1, 2], [0], [0]>} : vector<2x8x8xbf16>, vector<2x8x16xbf16>, vector<2x8x16xf32> -> vector<2x8x16xf32>
    "tpu.trace_stop"() : () -> ()
    %60 = vector.shape_cast %59 : vector<2x8x16xf32> to vector<16x16xf32>
    %61 = vector.extract_strided_slice %20 {offsets = [0, 16], sizes = [16, 16], strides = [1, 1]} : vector<16x32xf32> to vector<16x16xf32>
    %62 = vector.shape_cast %61 : vector<16x16xf32> to vector<2x8x16xf32>
    %63 = arith.truncf %62 : vector<2x8x16xf32> to vector<2x8x16xbf16>
    %64 = vector.extract_strided_slice %27 {offsets = [0, 16], sizes = [16, 16], strides = [1, 1]} : vector<16x32xf32> to vector<16x16xf32>
    %65 = vector.shape_cast %64 : vector<16x16xf32> to vector<2x8x16xf32>
    %66 = arith.truncf %65 : vector<2x8x16xf32> to vector<2x8x16xbf16>
    %67 = vector.extract_strided_slice %34 {offsets = [0, 16], sizes = [16, 16], strides = [1, 1]} : vector<16x32xf32> to vector<16x16xf32>
    %68 = vector.shape_cast %67 : vector<16x16xf32> to vector<2x8x16xf32>
    %69 = arith.truncf %68 : vector<2x8x16xf32> to vector<2x8x16xbf16>
    "tpu.trace_start"() <{level = 10 : i32, message = "bqd,bkd->bqk"}> : () -> ()
    %cst_32 = arith.constant dense<0.000000e+00> : vector<2x8x8xf32>
    %70 = tpu.matmul %63, %66, %cst_32 {dimension_numbers = #tpu.dot_dimension_numbers<[2], [2], [1], [1], [0, 0, 0, 1, 1, 1], [0], [0]>} : vector<2x8x16xbf16>, vector<2x8x16xbf16>, vector<2x8x8xf32> -> vector<2x8x8xf32>
    "tpu.trace_stop"() : () -> ()
    %71 = vector.shape_cast %12 : vector<8x8xf32> to vector<1x8x8xf32>
    %72 = vector.broadcast %71 : vector<1x8x8xf32> to vector<2x8x8xf32>
    %73 = arith.addf %70, %72 : vector<2x8x8xf32>
    %cst_33 = arith.constant dense<0xFF800000> : vector<2x8xf32>
    %74 = vector.multi_reduction <maximumf>, %73, %cst_33 [2] : vector<2x8x8xf32> to vector<2x8xf32>
    %75 = vector.shape_cast %74 : vector<2x8xf32> to vector<2x8x1xf32>
    %76 = vector.broadcast %75 : vector<2x8x1xf32> to vector<2x8x8xf32>
    %77 = arith.subf %73, %76 : vector<2x8x8xf32>
    %78 = math.exp %77 : vector<2x8x8xf32>
    %cst_34 = arith.constant dense<0.000000e+00> : vector<2x8xf32>
    %79 = vector.multi_reduction <add>, %78, %cst_34 [2] : vector<2x8x8xf32> to vector<2x8xf32>
    %80 = vector.shape_cast %79 : vector<2x8xf32> to vector<2x8x1xf32>
    %81 = tpu.reciprocal %80 {approx = true} : vector<2x8x1xf32> -> vector<2x8x1xf32>
    %82 = vector.broadcast %81 : vector<2x8x1xf32> to vector<2x8x8xf32>
    %83 = arith.mulf %78, %82 : vector<2x8x8xf32>
    %84 = arith.truncf %83 : vector<2x8x8xf32> to vector<2x8x8xbf16>
    "tpu.trace_start"() <{level = 10 : i32, message = "bqk,bkd->bqd"}> : () -> ()
    %cst_35 = arith.constant dense<0.000000e+00> : vector<2x8x16xf32>
    %85 = tpu.matmul %84, %69, %cst_35 {dimension_numbers = #tpu.dot_dimension_numbers<[2], [1], [1], [2], [0, 0, 0, 1, 1, 2], [0], [0]>} : vector<2x8x8xbf16>, vector<2x8x16xbf16>, vector<2x8x16xf32> -> vector<2x8x16xf32>
    "tpu.trace_stop"() : () -> ()
    %86 = vector.shape_cast %85 : vector<2x8x16xf32> to vector<16x16xf32>
    %87 = tpu.concatenate %60, %86 in 1 : vector<16x16xf32>, vector<16x16xf32> -> vector<16x32xf32>
    %88 = arith.truncf %87 : vector<16x32xf32> to vector<16x32xbf16>
    %c0_36 = arith.constant 0 : index
    %c0_37 = arith.constant 0 : index
    %c0_38 = arith.constant 0 : index
    %89 = vector.load %arg11[%c0_36, %c0_37, %c0_38] : memref<2x32x32xbf16, #tpu.memory_space<vmem>>, vector<1x32x32xbf16>
    %90 = vector.shape_cast %89 : vector<1x32x32xbf16> to vector<32x32xbf16>
    %cst_39 = arith.constant dense<0.000000e+00> : vector<16x32xf32>
    %91 = tpu.matmul %88, %90, %cst_39 {dimension_numbers = #tpu.dot_dimension_numbers<[1], [0], [0], [1], [0, 0, 1, 1], [], []>} : vector<16x32xbf16>, vector<32x32xbf16>, vector<16x32xf32> -> vector<16x32xf32>
    %c0_40 = arith.constant 0 : index
    %c0_41 = arith.constant 0 : index
    %c0_42 = arith.constant 0 : index
    %92 = vector.load %arg12[%c0_40, %c0_41, %c0_42] : memref<2x1x32xf32, #tpu.memory_space<vmem>>, vector<1x1x32xf32>
    %93 = vector.shape_cast %92 : vector<1x1x32xf32> to vector<1x32xf32>
    %94 = vector.broadcast %93 : vector<1x32xf32> to vector<16x32xf32>
    %95 = arith.addf %91, %94 : vector<16x32xf32>
    %96 = arith.addf %11, %95 : vector<16x32xf32>
    %c0_43 = arith.constant 0 : index
    %c0_44 = arith.constant 0 : index
    %c0_45 = arith.constant 0 : index
    %97 = vector.load %arg13[%c0_43, %c0_44, %c0_45] : memref<2x1x32xf32, #tpu.memory_space<vmem>>, vector<1x1x32xf32>
    %98 = vector.shape_cast %97 : vector<1x1x32xf32> to vector<1x32xf32>
    %c0_46 = arith.constant 0 : index
    %c0_47 = arith.constant 0 : index
    %c0_48 = arith.constant 0 : index
    %99 = vector.load %arg14[%c0_46, %c0_47, %c0_48] : memref<2x1x32xf32, #tpu.memory_space<vmem>>, vector<1x1x32xf32>
    %100 = vector.shape_cast %99 : vector<1x1x32xf32> to vector<1x32xf32>
    %cst_49 = arith.constant dense<0.000000e+00> : vector<16xf32>
    %101 = vector.multi_reduction <add>, %96, %cst_49 [1] : vector<16x32xf32> to vector<16xf32>
    %102 = vector.shape_cast %101 : vector<16xf32> to vector<16x1xf32>
    %cst_50 = arith.constant 3.200000e+01 : f32
    %103 = vector.broadcast %cst_50 : f32 to vector<16x1xf32>
    %104 = arith.divf %102, %103 : vector<16x1xf32>
    %105 = vector.broadcast %104 : vector<16x1xf32> to vector<16x32xf32>
    %106 = arith.subf %96, %105 : vector<16x32xf32>
    %107 = arith.mulf %106, %106 : vector<16x32xf32>
    %cst_51 = arith.constant dense<0.000000e+00> : vector<16xf32>
    %108 = vector.multi_reduction <add>, %107, %cst_51 [1] : vector<16x32xf32> to vector<16xf32>
    %109 = vector.shape_cast %108 : vector<16xf32> to vector<16x1xf32>
    %cst_52 = arith.constant 3.200000e+01 : f32
    %110 = vector.broadcast %cst_52 : f32 to vector<16x1xf32>
    %111 = arith.divf %109, %110 : vector<16x1xf32>
    %112 = vector.broadcast %104 : vector<16x1xf32> to vector<16x32xf32>
    %113 = arith.subf %96, %112 : vector<16x32xf32>
    %cst_53 = arith.constant 9.99999974E-6 : f32
    %114 = vector.broadcast %cst_53 : f32 to vector<16x1xf32>
    %115 = arith.addf %111, %114 : vector<16x1xf32>
    %116 = math.rsqrt %115 : vector<16x1xf32>
    %117 = vector.broadcast %116 : vector<16x1xf32> to vector<16x32xf32>
    %118 = arith.mulf %113, %117 : vector<16x32xf32>
    %119 = vector.broadcast %98 : vector<1x32xf32> to vector<16x32xf32>
    %120 = arith.mulf %118, %119 : vector<16x32xf32>
    %121 = vector.broadcast %100 : vector<1x32xf32> to vector<16x32xf32>
    %122 = arith.addf %120, %121 : vector<16x32xf32>
    %123 = arith.truncf %122 : vector<16x32xf32> to vector<16x32xbf16>
    %c0_54 = arith.constant 0 : index
    %c0_55 = arith.constant 0 : index
    %c0_56 = arith.constant 0 : index
    %124 = vector.load %arg15[%c0_54, %c0_55, %c0_56] : memref<2x32x64xbf16, #tpu.memory_space<vmem>>, vector<1x32x64xbf16>
    %125 = vector.shape_cast %124 : vector<1x32x64xbf16> to vector<32x64xbf16>
    %cst_57 = arith.constant dense<0.000000e+00> : vector<16x64xf32>
    %126 = tpu.matmul %123, %125, %cst_57 {dimension_numbers = #tpu.dot_dimension_numbers<[1], [0], [0], [1], [0, 0, 1, 1], [], []>} : vector<16x32xbf16>, vector<32x64xbf16>, vector<16x64xf32> -> vector<16x64xf32>
    %c0_58 = arith.constant 0 : index
    %c0_59 = arith.constant 0 : index
    %c0_60 = arith.constant 0 : index
    %127 = vector.load %arg16[%c0_58, %c0_59, %c0_60] : memref<2x1x64xf32, #tpu.memory_space<vmem>>, vector<1x1x64xf32>
    %128 = vector.shape_cast %127 : vector<1x1x64xf32> to vector<1x64xf32>
    %129 = vector.broadcast %128 : vector<1x64xf32> to vector<16x64xf32>
    %130 = arith.addf %126, %129 : vector<16x64xf32>
    %cst_61 = arith.constant 0.000000e+00 : f32
    %131 = vector.broadcast %cst_61 : f32 to vector<16x64xf32>
    %132 = arith.maximumf %130, %131 : vector<16x64xf32>
    %133 = arith.truncf %132 : vector<16x64xf32> to vector<16x64xbf16>
    %c0_62 = arith.constant 0 : index
    %c0_63 = arith.constant 0 : index
    %c0_64 = arith.constant 0 : index
    %134 = vector.load %arg17[%c0_62, %c0_63, %c0_64] : memref<2x64x32xbf16, #tpu.memory_space<vmem>>, vector<1x64x32xbf16>
    %135 = vector.shape_cast %134 : vector<1x64x32xbf16> to vector<64x32xbf16>
    %cst_65 = arith.constant dense<0.000000e+00> : vector<16x32xf32>
    %136 = tpu.matmul %133, %135, %cst_65 {dimension_numbers = #tpu.dot_dimension_numbers<[1], [0], [0], [1], [0, 0, 1, 1], [], []>} : vector<16x64xbf16>, vector<64x32xbf16>, vector<16x32xf32> -> vector<16x32xf32>
    %c0_66 = arith.constant 0 : index
    %c0_67 = arith.constant 0 : index
    %c0_68 = arith.constant 0 : index
    %137 = vector.load %arg18[%c0_66, %c0_67, %c0_68] : memref<2x1x32xf32, #tpu.memory_space<vmem>>, vector<1x1x32xf32>
    %138 = vector.shape_cast %137 : vector<1x1x32xf32> to vector<1x32xf32>
    %139 = vector.broadcast %138 : vector<1x32xf32> to vector<16x32xf32>
    %140 = arith.addf %136, %139 : vector<16x32xf32>
    %141 = arith.addf %122, %140 : vector<16x32xf32>
    %c0_69 = arith.constant 0 : index
    %c0_70 = arith.constant 0 : index
    %c0_71 = arith.constant 0 : index
    %142 = vector.load %arg19[%c0_69, %c0_70, %c0_71] : memref<2x1x32xf32, #tpu.memory_space<vmem>>, vector<1x1x32xf32>
    %143 = vector.shape_cast %142 : vector<1x1x32xf32> to vector<1x32xf32>
    %c0_72 = arith.constant 0 : index
    %c0_73 = arith.constant 0 : index
    %c0_74 = arith.constant 0 : index
    %144 = vector.load %arg20[%c0_72, %c0_73, %c0_74] : memref<2x1x32xf32, #tpu.memory_space<vmem>>, vector<1x1x32xf32>
    %145 = vector.shape_cast %144 : vector<1x1x32xf32> to vector<1x32xf32>
    %cst_75 = arith.constant dense<0.000000e+00> : vector<16xf32>
    %146 = vector.multi_reduction <add>, %141, %cst_75 [1] : vector<16x32xf32> to vector<16xf32>
    %147 = vector.shape_cast %146 : vector<16xf32> to vector<16x1xf32>
    %cst_76 = arith.constant 3.200000e+01 : f32
    %148 = vector.broadcast %cst_76 : f32 to vector<16x1xf32>
    %149 = arith.divf %147, %148 : vector<16x1xf32>
    %150 = vector.broadcast %149 : vector<16x1xf32> to vector<16x32xf32>
    %151 = arith.subf %141, %150 : vector<16x32xf32>
    %152 = arith.mulf %151, %151 : vector<16x32xf32>
    %cst_77 = arith.constant dense<0.000000e+00> : vector<16xf32>
    %153 = vector.multi_reduction <add>, %152, %cst_77 [1] : vector<16x32xf32> to vector<16xf32>
    %154 = vector.shape_cast %153 : vector<16xf32> to vector<16x1xf32>
    %cst_78 = arith.constant 3.200000e+01 : f32
    %155 = vector.broadcast %cst_78 : f32 to vector<16x1xf32>
    %156 = arith.divf %154, %155 : vector<16x1xf32>
    %157 = vector.broadcast %149 : vector<16x1xf32> to vector<16x32xf32>
    %158 = arith.subf %141, %157 : vector<16x32xf32>
    %cst_79 = arith.constant 9.99999974E-6 : f32
    %159 = vector.broadcast %cst_79 : f32 to vector<16x1xf32>
    %160 = arith.addf %156, %159 : vector<16x1xf32>
    %161 = math.rsqrt %160 : vector<16x1xf32>
    %162 = vector.broadcast %161 : vector<16x1xf32> to vector<16x32xf32>
    %163 = arith.mulf %158, %162 : vector<16x32xf32>
    %164 = vector.broadcast %143 : vector<1x32xf32> to vector<16x32xf32>
    %165 = arith.mulf %163, %164 : vector<16x32xf32>
    %166 = vector.broadcast %145 : vector<1x32xf32> to vector<16x32xf32>
    %167 = arith.addf %165, %166 : vector<16x32xf32>
    %168 = arith.truncf %167 : vector<16x32xf32> to vector<16x32xbf16>
    %c1 = arith.constant 1 : index
    %c0_80 = arith.constant 0 : index
    %c0_81 = arith.constant 0 : index
    %169 = vector.load %arg5[%c1, %c0_80, %c0_81] : memref<2x32x32xbf16, #tpu.memory_space<vmem>>, vector<1x32x32xbf16>
    %170 = vector.shape_cast %169 : vector<1x32x32xbf16> to vector<32x32xbf16>
    %cst_82 = arith.constant dense<0.000000e+00> : vector<16x32xf32>
    %171 = tpu.matmul %168, %170, %cst_82 {dimension_numbers = #tpu.dot_dimension_numbers<[1], [0], [0], [1], [0, 0, 1, 1], [], []>} : vector<16x32xbf16>, vector<32x32xbf16>, vector<16x32xf32> -> vector<16x32xf32>
    %c1_83 = arith.constant 1 : index
    %c0_84 = arith.constant 0 : index
    %c0_85 = arith.constant 0 : index
    %172 = vector.load %arg6[%c1_83, %c0_84, %c0_85] : memref<2x1x32xf32, #tpu.memory_space<vmem>>, vector<1x1x32xf32>
    %173 = vector.shape_cast %172 : vector<1x1x32xf32> to vector<1x32xf32>
    %174 = vector.broadcast %173 : vector<1x32xf32> to vector<16x32xf32>
    %175 = arith.addf %171, %174 : vector<16x32xf32>
    %c1_86 = arith.constant 1 : index
    %c0_87 = arith.constant 0 : index
    %c0_88 = arith.constant 0 : index
    %176 = vector.load %arg7[%c1_86, %c0_87, %c0_88] : memref<2x32x32xbf16, #tpu.memory_space<vmem>>, vector<1x32x32xbf16>
    %177 = vector.shape_cast %176 : vector<1x32x32xbf16> to vector<32x32xbf16>
    %cst_89 = arith.constant dense<0.000000e+00> : vector<16x32xf32>
    %178 = tpu.matmul %168, %177, %cst_89 {dimension_numbers = #tpu.dot_dimension_numbers<[1], [0], [0], [1], [0, 0, 1, 1], [], []>} : vector<16x32xbf16>, vector<32x32xbf16>, vector<16x32xf32> -> vector<16x32xf32>
    %c1_90 = arith.constant 1 : index
    %c0_91 = arith.constant 0 : index
    %c0_92 = arith.constant 0 : index
    %179 = vector.load %arg8[%c1_90, %c0_91, %c0_92] : memref<2x1x32xf32, #tpu.memory_space<vmem>>, vector<1x1x32xf32>
    %180 = vector.shape_cast %179 : vector<1x1x32xf32> to vector<1x32xf32>
    %181 = vector.broadcast %180 : vector<1x32xf32> to vector<16x32xf32>
    %182 = arith.addf %178, %181 : vector<16x32xf32>
    %c1_93 = arith.constant 1 : index
    %c0_94 = arith.constant 0 : index
    %c0_95 = arith.constant 0 : index
    %183 = vector.load %arg9[%c1_93, %c0_94, %c0_95] : memref<2x32x32xbf16, #tpu.memory_space<vmem>>, vector<1x32x32xbf16>
    %184 = vector.shape_cast %183 : vector<1x32x32xbf16> to vector<32x32xbf16>
    %cst_96 = arith.constant dense<0.000000e+00> : vector<16x32xf32>
    %185 = tpu.matmul %168, %184, %cst_96 {dimension_numbers = #tpu.dot_dimension_numbers<[1], [0], [0], [1], [0, 0, 1, 1], [], []>} : vector<16x32xbf16>, vector<32x32xbf16>, vector<16x32xf32> -> vector<16x32xf32>
    %c1_97 = arith.constant 1 : index
    %c0_98 = arith.constant 0 : index
    %c0_99 = arith.constant 0 : index
    %186 = vector.load %arg10[%c1_97, %c0_98, %c0_99] : memref<2x1x32xf32, #tpu.memory_space<vmem>>, vector<1x1x32xf32>
    %187 = vector.shape_cast %186 : vector<1x1x32xf32> to vector<1x32xf32>
    %188 = vector.broadcast %187 : vector<1x32xf32> to vector<16x32xf32>
    %189 = arith.addf %185, %188 : vector<16x32xf32>
    %190 = vector.extract_strided_slice %175 {offsets = [0, 0], sizes = [16, 16], strides = [1, 1]} : vector<16x32xf32> to vector<16x16xf32>
    %191 = vector.shape_cast %190 : vector<16x16xf32> to vector<2x8x16xf32>
    %192 = arith.truncf %191 : vector<2x8x16xf32> to vector<2x8x16xbf16>
    %193 = vector.extract_strided_slice %182 {offsets = [0, 0], sizes = [16, 16], strides = [1, 1]} : vector<16x32xf32> to vector<16x16xf32>
    %194 = vector.shape_cast %193 : vector<16x16xf32> to vector<2x8x16xf32>
    %195 = arith.truncf %194 : vector<2x8x16xf32> to vector<2x8x16xbf16>
    %196 = vector.extract_strided_slice %189 {offsets = [0, 0], sizes = [16, 16], strides = [1, 1]} : vector<16x32xf32> to vector<16x16xf32>
    %197 = vector.shape_cast %196 : vector<16x16xf32> to vector<2x8x16xf32>
    %198 = arith.truncf %197 : vector<2x8x16xf32> to vector<2x8x16xbf16>
    "tpu.trace_start"() <{level = 10 : i32, message = "bqd,bkd->bqk"}> : () -> ()
    %cst_100 = arith.constant dense<0.000000e+00> : vector<2x8x8xf32>
    %199 = tpu.matmul %192, %195, %cst_100 {dimension_numbers = #tpu.dot_dimension_numbers<[2], [2], [1], [1], [0, 0, 0, 1, 1, 1], [0], [0]>} : vector<2x8x16xbf16>, vector<2x8x16xbf16>, vector<2x8x8xf32> -> vector<2x8x8xf32>
    "tpu.trace_stop"() : () -> ()
    %200 = vector.shape_cast %12 : vector<8x8xf32> to vector<1x8x8xf32>
    %201 = vector.broadcast %200 : vector<1x8x8xf32> to vector<2x8x8xf32>
    %202 = arith.addf %199, %201 : vector<2x8x8xf32>
    %cst_101 = arith.constant dense<0xFF800000> : vector<2x8xf32>
    %203 = vector.multi_reduction <maximumf>, %202, %cst_101 [2] : vector<2x8x8xf32> to vector<2x8xf32>
    %204 = vector.shape_cast %203 : vector<2x8xf32> to vector<2x8x1xf32>
    %205 = vector.broadcast %204 : vector<2x8x1xf32> to vector<2x8x8xf32>
    %206 = arith.subf %202, %205 : vector<2x8x8xf32>
    %207 = math.exp %206 : vector<2x8x8xf32>
    %cst_102 = arith.constant dense<0.000000e+00> : vector<2x8xf32>
    %208 = vector.multi_reduction <add>, %207, %cst_102 [2] : vector<2x8x8xf32> to vector<2x8xf32>
    %209 = vector.shape_cast %208 : vector<2x8xf32> to vector<2x8x1xf32>
    %210 = tpu.reciprocal %209 {approx = true} : vector<2x8x1xf32> -> vector<2x8x1xf32>
    %211 = vector.broadcast %210 : vector<2x8x1xf32> to vector<2x8x8xf32>
    %212 = arith.mulf %207, %211 : vector<2x8x8xf32>
    %213 = arith.truncf %212 : vector<2x8x8xf32> to vector<2x8x8xbf16>
    "tpu.trace_start"() <{level = 10 : i32, message = "bqk,bkd->bqd"}> : () -> ()
    %cst_103 = arith.constant dense<0.000000e+00> : vector<2x8x16xf32>
    %214 = tpu.matmul %213, %198, %cst_103 {dimension_numbers = #tpu.dot_dimension_numbers<[2], [1], [1], [2], [0, 0, 0, 1, 1, 2], [0], [0]>} : vector<2x8x8xbf16>, vector<2x8x16xbf16>, vector<2x8x16xf32> -> vector<2x8x16xf32>
    "tpu.trace_stop"() : () -> ()
    %215 = vector.shape_cast %214 : vector<2x8x16xf32> to vector<16x16xf32>
    %216 = vector.extract_strided_slice %175 {offsets = [0, 16], sizes = [16, 16], strides = [1, 1]} : vector<16x32xf32> to vector<16x16xf32>
    %217 = vector.shape_cast %216 : vector<16x16xf32> to vector<2x8x16xf32>
    %218 = arith.truncf %217 : vector<2x8x16xf32> to vector<2x8x16xbf16>
    %219 = vector.extract_strided_slice %182 {offsets = [0, 16], sizes = [16, 16], strides = [1, 1]} : vector<16x32xf32> to vector<16x16xf32>
    %220 = vector.shape_cast %219 : vector<16x16xf32> to vector<2x8x16xf32>
    %221 = arith.truncf %220 : vector<2x8x16xf32> to vector<2x8x16xbf16>
    %222 = vector.extract_strided_slice %189 {offsets = [0, 16], sizes = [16, 16], strides = [1, 1]} : vector<16x32xf32> to vector<16x16xf32>
    %223 = vector.shape_cast %222 : vector<16x16xf32> to vector<2x8x16xf32>
    %224 = arith.truncf %223 : vector<2x8x16xf32> to vector<2x8x16xbf16>
    "tpu.trace_start"() <{level = 10 : i32, message = "bqd,bkd->bqk"}> : () -> ()
    %cst_104 = arith.constant dense<0.000000e+00> : vector<2x8x8xf32>
    %225 = tpu.matmul %218, %221, %cst_104 {dimension_numbers = #tpu.dot_dimension_numbers<[2], [2], [1], [1], [0, 0, 0, 1, 1, 1], [0], [0]>} : vector<2x8x16xbf16>, vector<2x8x16xbf16>, vector<2x8x8xf32> -> vector<2x8x8xf32>
    "tpu.trace_stop"() : () -> ()
    %226 = vector.shape_cast %12 : vector<8x8xf32> to vector<1x8x8xf32>
    %227 = vector.broadcast %226 : vector<1x8x8xf32> to vector<2x8x8xf32>
    %228 = arith.addf %225, %227 : vector<2x8x8xf32>
    %cst_105 = arith.constant dense<0xFF800000> : vector<2x8xf32>
    %229 = vector.multi_reduction <maximumf>, %228, %cst_105 [2] : vector<2x8x8xf32> to vector<2x8xf32>
    %230 = vector.shape_cast %229 : vector<2x8xf32> to vector<2x8x1xf32>
    %231 = vector.broadcast %230 : vector<2x8x1xf32> to vector<2x8x8xf32>
    %232 = arith.subf %228, %231 : vector<2x8x8xf32>
    %233 = math.exp %232 : vector<2x8x8xf32>
    %cst_106 = arith.constant dense<0.000000e+00> : vector<2x8xf32>
    %234 = vector.multi_reduction <add>, %233, %cst_106 [2] : vector<2x8x8xf32> to vector<2x8xf32>
    %235 = vector.shape_cast %234 : vector<2x8xf32> to vector<2x8x1xf32>
    %236 = tpu.reciprocal %235 {approx = true} : vector<2x8x1xf32> -> vector<2x8x1xf32>
    %237 = vector.broadcast %236 : vector<2x8x1xf32> to vector<2x8x8xf32>
    %238 = arith.mulf %233, %237 : vector<2x8x8xf32>
    %239 = arith.truncf %238 : vector<2x8x8xf32> to vector<2x8x8xbf16>
    "tpu.trace_start"() <{level = 10 : i32, message = "bqk,bkd->bqd"}> : () -> ()
    %cst_107 = arith.constant dense<0.000000e+00> : vector<2x8x16xf32>
    %240 = tpu.matmul %239, %224, %cst_107 {dimension_numbers = #tpu.dot_dimension_numbers<[2], [1], [1], [2], [0, 0, 0, 1, 1, 2], [0], [0]>} : vector<2x8x8xbf16>, vector<2x8x16xbf16>, vector<2x8x16xf32> -> vector<2x8x16xf32>
    "tpu.trace_stop"() : () -> ()
    %241 = vector.shape_cast %240 : vector<2x8x16xf32> to vector<16x16xf32>
    %242 = tpu.concatenate %215, %241 in 1 : vector<16x16xf32>, vector<16x16xf32> -> vector<16x32xf32>
    %243 = arith.truncf %242 : vector<16x32xf32> to vector<16x32xbf16>
    %c1_108 = arith.constant 1 : index
    %c0_109 = arith.constant 0 : index
    %c0_110 = arith.constant 0 : index
    %244 = vector.load %arg11[%c1_108, %c0_109, %c0_110] : memref<2x32x32xbf16, #tpu.memory_space<vmem>>, vector<1x32x32xbf16>
    %245 = vector.shape_cast %244 : vector<1x32x32xbf16> to vector<32x32xbf16>
    %cst_111 = arith.constant dense<0.000000e+00> : vector<16x32xf32>
    %246 = tpu.matmul %243, %245, %cst_111 {dimension_numbers = #tpu.dot_dimension_numbers<[1], [0], [0], [1], [0, 0, 1, 1], [], []>} : vector<16x32xbf16>, vector<32x32xbf16>, vector<16x32xf32> -> vector<16x32xf32>
    %c1_112 = arith.constant 1 : index
    %c0_113 = arith.constant 0 : index
    %c0_114 = arith.constant 0 : index
    %247 = vector.load %arg12[%c1_112, %c0_113, %c0_114] : memref<2x1x32xf32, #tpu.memory_space<vmem>>, vector<1x1x32xf32>
    %248 = vector.shape_cast %247 : vector<1x1x32xf32> to vector<1x32xf32>
    %249 = vector.broadcast %248 : vector<1x32xf32> to vector<16x32xf32>
    %250 = arith.addf %246, %249 : vector<16x32xf32>
    %251 = arith.addf %167, %250 : vector<16x32xf32>
    %c1_115 = arith.constant 1 : index
    %c0_116 = arith.constant 0 : index
    %c0_117 = arith.constant 0 : index
    %252 = vector.load %arg13[%c1_115, %c0_116, %c0_117] : memref<2x1x32xf32, #tpu.memory_space<vmem>>, vector<1x1x32xf32>
    %253 = vector.shape_cast %252 : vector<1x1x32xf32> to vector<1x32xf32>
    %c1_118 = arith.constant 1 : index
    %c0_119 = arith.constant 0 : index
    %c0_120 = arith.constant 0 : index
    %254 = vector.load %arg14[%c1_118, %c0_119, %c0_120] : memref<2x1x32xf32, #tpu.memory_space<vmem>>, vector<1x1x32xf32>
    %255 = vector.shape_cast %254 : vector<1x1x32xf32> to vector<1x32xf32>
    %cst_121 = arith.constant dense<0.000000e+00> : vector<16xf32>
    %256 = vector.multi_reduction <add>, %251, %cst_121 [1] : vector<16x32xf32> to vector<16xf32>
    %257 = vector.shape_cast %256 : vector<16xf32> to vector<16x1xf32>
    %cst_122 = arith.constant 3.200000e+01 : f32
    %258 = vector.broadcast %cst_122 : f32 to vector<16x1xf32>
    %259 = arith.divf %257, %258 : vector<16x1xf32>
    %260 = vector.broadcast %259 : vector<16x1xf32> to vector<16x32xf32>
    %261 = arith.subf %251, %260 : vector<16x32xf32>
    %262 = arith.mulf %261, %261 : vector<16x32xf32>
    %cst_123 = arith.constant dense<0.000000e+00> : vector<16xf32>
    %263 = vector.multi_reduction <add>, %262, %cst_123 [1] : vector<16x32xf32> to vector<16xf32>
    %264 = vector.shape_cast %263 : vector<16xf32> to vector<16x1xf32>
    %cst_124 = arith.constant 3.200000e+01 : f32
    %265 = vector.broadcast %cst_124 : f32 to vector<16x1xf32>
    %266 = arith.divf %264, %265 : vector<16x1xf32>
    %267 = vector.broadcast %259 : vector<16x1xf32> to vector<16x32xf32>
    %268 = arith.subf %251, %267 : vector<16x32xf32>
    %cst_125 = arith.constant 9.99999974E-6 : f32
    %269 = vector.broadcast %cst_125 : f32 to vector<16x1xf32>
    %270 = arith.addf %266, %269 : vector<16x1xf32>
    %271 = math.rsqrt %270 : vector<16x1xf32>
    %272 = vector.broadcast %271 : vector<16x1xf32> to vector<16x32xf32>
    %273 = arith.mulf %268, %272 : vector<16x32xf32>
    %274 = vector.broadcast %253 : vector<1x32xf32> to vector<16x32xf32>
    %275 = arith.mulf %273, %274 : vector<16x32xf32>
    %276 = vector.broadcast %255 : vector<1x32xf32> to vector<16x32xf32>
    %277 = arith.addf %275, %276 : vector<16x32xf32>
    %278 = arith.truncf %277 : vector<16x32xf32> to vector<16x32xbf16>
    %c1_126 = arith.constant 1 : index
    %c0_127 = arith.constant 0 : index
    %c0_128 = arith.constant 0 : index
    %279 = vector.load %arg15[%c1_126, %c0_127, %c0_128] : memref<2x32x64xbf16, #tpu.memory_space<vmem>>, vector<1x32x64xbf16>
    %280 = vector.shape_cast %279 : vector<1x32x64xbf16> to vector<32x64xbf16>
    %cst_129 = arith.constant dense<0.000000e+00> : vector<16x64xf32>
    %281 = tpu.matmul %278, %280, %cst_129 {dimension_numbers = #tpu.dot_dimension_numbers<[1], [0], [0], [1], [0, 0, 1, 1], [], []>} : vector<16x32xbf16>, vector<32x64xbf16>, vector<16x64xf32> -> vector<16x64xf32>
    %c1_130 = arith.constant 1 : index
    %c0_131 = arith.constant 0 : index
    %c0_132 = arith.constant 0 : index
    %282 = vector.load %arg16[%c1_130, %c0_131, %c0_132] : memref<2x1x64xf32, #tpu.memory_space<vmem>>, vector<1x1x64xf32>
    %283 = vector.shape_cast %282 : vector<1x1x64xf32> to vector<1x64xf32>
    %284 = vector.broadcast %283 : vector<1x64xf32> to vector<16x64xf32>
    %285 = arith.addf %281, %284 : vector<16x64xf32>
    %cst_133 = arith.constant 0.000000e+00 : f32
    %286 = vector.broadcast %cst_133 : f32 to vector<16x64xf32>
    %287 = arith.maximumf %285, %286 : vector<16x64xf32>
    %288 = arith.truncf %287 : vector<16x64xf32> to vector<16x64xbf16>
    %c1_134 = arith.constant 1 : index
    %c0_135 = arith.constant 0 : index
    %c0_136 = arith.constant 0 : index
    %289 = vector.load %arg17[%c1_134, %c0_135, %c0_136] : memref<2x64x32xbf16, #tpu.memory_space<vmem>>, vector<1x64x32xbf16>
    %290 = vector.shape_cast %289 : vector<1x64x32xbf16> to vector<64x32xbf16>
    %cst_137 = arith.constant dense<0.000000e+00> : vector<16x32xf32>
    %291 = tpu.matmul %288, %290, %cst_137 {dimension_numbers = #tpu.dot_dimension_numbers<[1], [0], [0], [1], [0, 0, 1, 1], [], []>} : vector<16x64xbf16>, vector<64x32xbf16>, vector<16x32xf32> -> vector<16x32xf32>
    %c1_138 = arith.constant 1 : index
    %c0_139 = arith.constant 0 : index
    %c0_140 = arith.constant 0 : index
    %292 = vector.load %arg18[%c1_138, %c0_139, %c0_140] : memref<2x1x32xf32, #tpu.memory_space<vmem>>, vector<1x1x32xf32>
    %293 = vector.shape_cast %292 : vector<1x1x32xf32> to vector<1x32xf32>
    %294 = vector.broadcast %293 : vector<1x32xf32> to vector<16x32xf32>
    %295 = arith.addf %291, %294 : vector<16x32xf32>
    %296 = arith.addf %277, %295 : vector<16x32xf32>
    %c1_141 = arith.constant 1 : index
    %c0_142 = arith.constant 0 : index
    %c0_143 = arith.constant 0 : index
    %297 = vector.load %arg19[%c1_141, %c0_142, %c0_143] : memref<2x1x32xf32, #tpu.memory_space<vmem>>, vector<1x1x32xf32>
    %298 = vector.shape_cast %297 : vector<1x1x32xf32> to vector<1x32xf32>
    %c1_144 = arith.constant 1 : index
    %c0_145 = arith.constant 0 : index
    %c0_146 = arith.constant 0 : index
    %299 = vector.load %arg20[%c1_144, %c0_145, %c0_146] : memref<2x1x32xf32, #tpu.memory_space<vmem>>, vector<1x1x32xf32>
    %300 = vector.shape_cast %299 : vector<1x1x32xf32> to vector<1x32xf32>
    %cst_147 = arith.constant dense<0.000000e+00> : vector<16xf32>
    %301 = vector.multi_reduction <add>, %296, %cst_147 [1] : vector<16x32xf32> to vector<16xf32>
    %302 = vector.shape_cast %301 : vector<16xf32> to vector<16x1xf32>
    %cst_148 = arith.constant 3.200000e+01 : f32
    %303 = vector.broadcast %cst_148 : f32 to vector<16x1xf32>
    %304 = arith.divf %302, %303 : vector<16x1xf32>
    %305 = vector.broadcast %304 : vector<16x1xf32> to vector<16x32xf32>
    %306 = arith.subf %296, %305 : vector<16x32xf32>
    %307 = arith.mulf %306, %306 : vector<16x32xf32>
    %cst_149 = arith.constant dense<0.000000e+00> : vector<16xf32>
    %308 = vector.multi_reduction <add>, %307, %cst_149 [1] : vector<16x32xf32> to vector<16xf32>
    %309 = vector.shape_cast %308 : vector<16xf32> to vector<16x1xf32>
    %cst_150 = arith.constant 3.200000e+01 : f32
    %310 = vector.broadcast %cst_150 : f32 to vector<16x1xf32>
    %311 = arith.divf %309, %310 : vector<16x1xf32>
    %312 = vector.broadcast %304 : vector<16x1xf32> to vector<16x32xf32>
    %313 = arith.subf %296, %312 : vector<16x32xf32>
    %cst_151 = arith.constant 9.99999974E-6 : f32
    %314 = vector.broadcast %cst_151 : f32 to vector<16x1xf32>
    %315 = arith.addf %311, %314 : vector<16x1xf32>
    %316 = math.rsqrt %315 : vector<16x1xf32>
    %317 = vector.broadcast %316 : vector<16x1xf32> to vector<16x32xf32>
    %318 = arith.mulf %313, %317 : vector<16x32xf32>
    %319 = vector.broadcast %298 : vector<1x32xf32> to vector<16x32xf32>
    %320 = arith.mulf %318, %319 : vector<16x32xf32>
    %321 = vector.broadcast %300 : vector<1x32xf32> to vector<16x32xf32>
    %322 = arith.addf %320, %321 : vector<16x32xf32>
    %323 = arith.truncf %322 : vector<16x32xf32> to vector<16x32xbf16>
    %c0_152 = arith.constant 0 : index
    %c0_153 = arith.constant 0 : index
    %324 = vector.load %arg21[%c0_152, %c0_153] : memref<32x128xbf16, #tpu.memory_space<vmem>>, vector<32x128xbf16>
    %cst_154 = arith.constant dense<0.000000e+00> : vector<16x128xf32>
    %325 = tpu.matmul %323, %324, %cst_154 {dimension_numbers = #tpu.dot_dimension_numbers<[1], [0], [0], [1], [0, 0, 1, 1], [], []>} : vector<16x32xbf16>, vector<32x128xbf16>, vector<16x128xf32> -> vector<16x128xf32>
    %c0_155 = arith.constant 0 : index
    %c0_156 = arith.constant 0 : index
    %326 = vector.load %arg22[%c0_155, %c0_156] : memref<1x128xf32, #tpu.memory_space<vmem>>, vector<1x128xf32>
    %327 = vector.broadcast %326 : vector<1x128xf32> to vector<16x128xf32>
    %328 = arith.addf %325, %327 : vector<16x128xf32>
    %c0_157 = arith.constant 0 : index
    %c0_158 = arith.constant 0 : index
    %329 = vector.load %arg23[%c0_157, %c0_158] : memref<16x128xf32, #tpu.memory_space<vmem>>, vector<16x128xf32>
    tpu.vector_store %arg23[%c0_157, %c0_158], %328 {strides = array<i32>} : memref<16x128xf32, #tpu.memory_space<vmem>>, vector<16x128xf32>,
    return
  }
  func.func @transform_0(%arg0: i32) -> (i32, i32) {
    %c0_i32 = arith.constant 0 : i32
    %c0_i32_0 = arith.constant 0 : i32
    %c0_i32_1 = arith.constant 0 : i32
    return %c0_i32, %c0_i32_0 : i32, i32
  }
  func.func @transform_1(%arg0: i32) -> (i32, i32) {
    %c0_i32 = arith.constant 0 : i32
    %c0_i32_0 = arith.constant 0 : i32
    %c0_i32_1 = arith.constant 0 : i32
    return %c0_i32, %c0_i32_0 : i32, i32
  }
  func.func @transform_2(%arg0: i32) -> (i32, i32) {
    %c0_i32 = arith.constant 0 : i32
    %c0_i32_0 = arith.constant 0 : i32
    %c0_i32_1 = arith.constant 0 : i32
    return %c0_i32, %c0_i32_0 : i32, i32
  }
  func.func @transform_3(%arg0: i32) -> (i32, i32) {
    %c0_i32 = arith.constant 0 : i32
    %c0_i32_0 = arith.constant 0 : i32
    %c0_i32_1 = arith.constant 0 : i32
    return %c0_i32, %c0_i32_0 : i32, i32
  }
  func.func @transform_4(%arg0: i32) -> (i32, i32, i32) {
    %c0_i32 = arith.constant 0 : i32
    %c0_i32_0 = arith.constant 0 : i32
    %c0_i32_1 = arith.constant 0 : i32
    %c0_i32_2 = arith.constant 0 : i32
    return %c0_i32, %c0_i32_0, %c0_i32_1 : i32, i32, i32
  }
  func.func @transform_5(%arg0: i32) -> (i32, i32, i32) {
    %c0_i32 = arith.constant 0 : i32
    %c0_i32_0 = arith.constant 0 : i32
    %c0_i32_1 = arith.constant 0 : i32
    %c0_i32_2 = arith.constant 0 : i32
    return %c0_i32, %c0_i32_0, %c0_i32_1 : i32, i32, i32
  }
  func.func @transform_6(%arg0: i32) -> (i32, i32, i32) {
    %c0_i32 = arith.constant 0 : i32
    %c0_i32_0 = arith.constant 0 : i32
    %c0_i32_1 = arith.constant 0 : i32
    %c0_i32_2 = arith.constant 0 : i32
    return %c0_i32, %c0_i32_0, %c0_i32_1 : i32, i32, i32
  }
  func.func @transform_7(%arg0: i32) -> (i32, i32, i32) {
    %c0_i32 = arith.constant 0 : i32
    %c0_i32_0 = arith.constant 0 : i32
    %c0_i32_1 = arith.constant 0 : i32
    %c0_i32_2 = arith.constant 0 : i32
    return %c0_i32, %c0_i32_0, %c0_i32_1 : i32, i32, i32
  }
  func.func @transform_8(%arg0: i32) -> (i32, i32, i32) {
    %c0_i32 = arith.constant 0 : i32
    %c0_i32_0 = arith.constant 0 : i32
    %c0_i32_1 = arith.constant 0 : i32
    %c0_i32_2 = arith.constant 0 : i32
    return %c0_i32, %c0_i32_0, %c0_i32_1 : i32, i32, i32
  }
  func.func @transform_9(%arg0: i32) -> (i32, i32, i32) {
    %c0_i32 = arith.constant 0 : i32
    %c0_i32_0 = arith.constant 0 : i32
    %c0_i32_1 = arith.constant 0 : i32
    %c0_i32_2 = arith.constant 0 : i32
    return %c0_i32, %c0_i32_0, %c0_i32_1 : i32, i32, i32
  }
  func.func @transform_10(%arg0: i32) -> (i32, i32, i32) {
    %c0_i32 = arith.constant 0 : i32
    %c0_i32_0 = arith.constant 0 : i32
    %c0_i32_1 = arith.constant 0 : i32
    %c0_i32_2 = arith.constant 0 : i32
    return %c0_i32, %c0_i32_0, %c0_i32_1 : i32, i32, i32
  }
  func.func @transform_11(%arg0: i32) -> (i32, i32, i32) {
    %c0_i32 = arith.constant 0 : i32
    %c0_i32_0 = arith.constant 0 : i32
    %c0_i32_1 = arith.constant 0 : i32
    %c0_i32_2 = arith.constant 0 : i32
    return %c0_i32, %c0_i32_0, %c0_i32_1 : i32, i32, i32
  }
  func.func @transform_12(%arg0: i32) -> (i32, i32, i32) {
    %c0_i32 = arith.constant 0 : i32
    %c0_i32_0 = arith.constant 0 : i32
    %c0_i32_1 = arith.constant 0 : i32
    %c0_i32_2 = arith.constant 0 : i32
    return %c0_i32, %c0_i32_0, %c0_i32_1 : i32, i32, i32
  }
  func.func @transform_13(%arg0: i32) -> (i32, i32, i32) {
    %c0_i32 = arith.constant 0 : i32
    %c0_i32_0 = arith.constant 0 : i32
    %c0_i32_1 = arith.constant 0 : i32
    %c0_i32_2 = arith.constant 0 : i32
    return %c0_i32, %c0_i32_0, %c0_i32_1 : i32, i32, i32
  }
  func.func @transform_14(%arg0: i32) -> (i32, i32, i32) {
    %c0_i32 = arith.constant 0 : i32
    %c0_i32_0 = arith.constant 0 : i32
    %c0_i32_1 = arith.constant 0 : i32
    %c0_i32_2 = arith.constant 0 : i32
    return %c0_i32, %c0_i32_0, %c0_i32_1 : i32, i32, i32
  }
  func.func @transform_15(%arg0: i32) -> (i32, i32, i32) {
    %c0_i32 = arith.constant 0 : i32
    %c0_i32_0 = arith.constant 0 : i32
    %c0_i32_1 = arith.constant 0 : i32
    %c0_i32_2 = arith.constant 0 : i32
    return %c0_i32, %c0_i32_0, %c0_i32_1 : i32, i32, i32
  }
  func.func @transform_16(%arg0: i32) -> (i32, i32, i32) {
    %c0_i32 = arith.constant 0 : i32
    %c0_i32_0 = arith.constant 0 : i32
    %c0_i32_1 = arith.constant 0 : i32
    %c0_i32_2 = arith.constant 0 : i32
    return %c0_i32, %c0_i32_0, %c0_i32_1 : i32, i32, i32
  }
  func.func @transform_17(%arg0: i32) -> (i32, i32, i32) {
    %c0_i32 = arith.constant 0 : i32
    %c0_i32_0 = arith.constant 0 : i32
    %c0_i32_1 = arith.constant 0 : i32
    %c0_i32_2 = arith.constant 0 : i32
    return %c0_i32, %c0_i32_0, %c0_i32_1 : i32, i32, i32
  }
  func.func @transform_18(%arg0: i32) -> (i32, i32, i32) {
    %c0_i32 = arith.constant 0 : i32
    %c0_i32_0 = arith.constant 0 : i32
    %c0_i32_1 = arith.constant 0 : i32
    %c0_i32_2 = arith.constant 0 : i32
    return %c0_i32, %c0_i32_0, %c0_i32_1 : i32, i32, i32
  }
  func.func @transform_19(%arg0: i32) -> (i32, i32, i32) {
    %c0_i32 = arith.constant 0 : i32
    %c0_i32_0 = arith.constant 0 : i32
    %c0_i32_1 = arith.constant 0 : i32
    %c0_i32_2 = arith.constant 0 : i32
    return %c0_i32, %c0_i32_0, %c0_i32_1 : i32, i32, i32
  }
  func.func @transform_20(%arg0: i32) -> (i32, i32) {
    %c0_i32 = arith.constant 0 : i32
    %c0_i32_0 = arith.constant 0 : i32
    %c0_i32_1 = arith.constant 0 : i32
    return %c0_i32, %c0_i32_0 : i32, i32
  }
  func.func @transform_21(%arg0: i32) -> (i32, i32) {
    %c0_i32 = arith.constant 0 : i32
    %c0_i32_0 = arith.constant 0 : i32
    %c0_i32_1 = arith.constant 0 : i32
    return %c0_i32, %c0_i32_0 : i32, i32
  }
  func.func @transform_22(%arg0: i32) -> (i32, i32) {
    %c0_i32 = arith.constant 0 : i32
    %c0_i32_0 = arith.constant 0 : i32
    %c0_i32_1 = arith.constant 0 : i32
    return %c0_i32, %c0_i32_0 : i32, i32
  }
}

</mosaic_0001>

<bundles_post_ra>
// kernel: tpu_custom_call.1
= control target key start
LH: loop header
LB: loop body
LE: loop exit
PB: predicated region body
PF: predicated region fallthrough
CT: control target
= control target key end

     0   :  { %s2466_s0 = inlined_call_operand.vmem [shape: s32[16,1], index: 0, kind: input, shape index: {}]   ;;  %s2467_s1 = inlined_call_operand.hbm [shape: f32[8,8], index: 1, kind: input, shape index: {}]   ;;  %s2468_s2 = inlined_call_operand.hbm [shape: f32[8,32], index: 2, kind: input, shape index: {}]   ;;  %s2469_s3 = inlined_call_operand.vmem [shape: bf16[128,32], index: 3, kind: input, shape index: {}]   ;;  %s2470_s4 = inlined_call_operand.vmem [shape: bf16[2,32,32], index: 4, kind: input, shape index: {}]   ;;  %s2471_s5 = inlined_call_operand.vmem [shape: f32[2,1,32], index: 5, kind: input, shape index: {}]   ;;  %s2472_s6 = inlined_call_operand.vmem [shape: bf16[2,32,32], index: 6, kind: input, shape index: {}]   ;;  %s2473_s7 = inlined_call_operand.vmem [shape: f32[2,1,32], index: 7, kind: input, shape index: {}]   ;;  %s2474_s8 = inlined_call_operand.vmem [shape: bf16[2,32,32], index: 8, kind: input, shape index: {}]   ;;  %s2475_s9 = inlined_call_operand.vmem [shape: f32[2,1,32], index: 9, kind: input, shape index: {}]   ;;  %s2476_s10 = inlined_call_operand.vmem [shape: bf16[2,32,32], index: 10, kind: input, shape index: {}]   ;;  %s2477_s11 = inlined_call_operand.vmem [shape: f32[2,1,32], index: 11, kind: input, shape index: {}]   ;;  %s2478_s12 = inlined_call_operand.vmem [shape: f32[2,1,32], index: 12, kind: input, shape index: {}]   ;;  %s2479_s13 = inlined_call_operand.vmem [shape: f32[2,1,32], index: 13, kind: input, shape index: {}]   ;;  %s2480_s14 = inlined_call_operand.hbm [shape: bf16[2,32,64], index: 14, kind: input, shape index: {}]   ;;  %s2481_s15 = inlined_call_operand.vmem [shape: f32[2,1,64], index: 15, kind: input, shape index: {}]   ;;  %s2482_s16 = inlined_call_operand.vmem [shape: bf16[2,64,32], index: 16, kind: input, shape index: {}]   ;;  %s2483_s17 = inlined_call_operand.hbm [shape: f32[2,1,32], index: 17, kind: input, shape index: {}]   ;;  %s2484_s18 = inlined_call_operand.vmem [shape: f32[2,1,32], index: 18, kind: input, shape index: {}]   ;;  %s2485_s19 = inlined_call_operand.vmem [shape: f32[2,1,32], index: 19, kind: input, shape index: {}]   ;;  %s2486_s20 = inlined_call_operand.vmem [shape: bf16[32,128], index: 20, kind: input, shape index: {}]   ;;  %s2487_s21 = inlined_call_operand.vmem [shape: f32[1,128], index: 21, kind: input, shape index: {}]   ;;  %s2488_s22 = inlined_call_operand.hbm [shape: f32[16,128], index: 22, kind: output, shape index: {}]  }
   0x1   :  { %2494 = sst [smem:[#allocation15_spill]] %s2466_s0 }
   0x2   :  { %2495 = sst [smem:[#allocation16_spill]] %s2467_s1 }
   0x3   :  { %2496 = sst [smem:[#allocation17_spill]] %s2468_s2 }
   0x4   :  { %2497 = sst [smem:[#allocation18_spill]] %s2469_s3 }
   0x5   :  { %2498 = sst [smem:[#allocation19_spill]] %s2470_s4 }
   0x6   :  { %2499 = sst [smem:[#allocation20_spill]] %s2471_s5 }
   0x7   :  { %2500 = sst [smem:[#allocation21_spill]] %s2472_s6 }
   0x8   :  { %2501 = sst [smem:[#allocation22_spill]] %s2488_s22 }
   0x9   :  { %27 = vsyncpa [#allocation3], 0 }
   0xa   :  { %28 = vsyncpa [#allocation6], 0 }
   0xb   :  { %29 = vsyncpa [#allocation9], 0  ;;  %s2502_s29 = sld [smem:[#allocation17_spill]] }
  0x11   :  { %s49_s30 = sshll.u32 %s2502_s29, 4  ;;  %s50_s30 = int_to_ptr.hbm [resolvable:$true] %s49_s30 }
  0x12   :  { %30 = vsyncpa [#allocation4], 0  ;;  %s1999_s4 = smov [#allocation5]   ;;  %s2503_s5 = sld [smem:[#allocation16_spill]] }
  0x13   :  { %s51_s0 = sshll.u32 %s1999_s4, 4  ;;  %s2000_s6 = smov [#allocation2]   ;;  %s52_s0 = int_to_ptr.vmem [resolvable:$true] %s51_s0 }
  0x14   :  { %54 = dma.hbm_to_vmem [thread:$0]  %s50_s30, 128, %s52_s0, [#allocation6]  }
  0x15   :  { %s40_s25 = sshll.u32 %s2000_s6, 4  ;;  %s81_s27 = sshll.u32 %s2480_s14, 4  ;;  %s41_s25 = int_to_ptr.vmem [resolvable:$true] %s40_s25  ;;  %s82_s27 = int_to_ptr.hbm [resolvable:$true] %s81_s27 }
  0x16   :  { %s2001_s3 = smov [#allocation7]   ;;  %s98_s22 = sshll.u32 %s2483_s17, 4  ;;  %s99_s22 = int_to_ptr.hbm [resolvable:$true] %s98_s22 }
  0x17   :  { %s83_s28 = sshll.u32 %s2001_s3, 4  ;;  %s2002_s23 = smov 64   ;;  %s84_s28 = int_to_ptr.vmem [resolvable:$true] %s83_s28 }
  0x18   :  { %s38_s24 = sshll.u32 %s2503_s5, 4  ;;  %s2003_s1 = smov 4   ;;  %s39_s24 = int_to_ptr.hbm [resolvable:$true] %s38_s24 }
  0x19   :  { %43 = dma.hbm_to_vmem [thread:$0]  %s39_s24, 128, %s41_s25, [#allocation3]  }
  0x1a   :  { %89 = dma.hbm_to_vmem [thread:$0]  %s82_s27, 512, %s84_s28, [#allocation6], %s2002_s23, %s2002_s23, %s2003_s1  }
  0x1b   :  { %s2004_s30 = smov [#allocation8]   ;;  %s2005_s5 = smov 16  }
  0x1c   :  { %s100_s0 = sshll.u32 %s2004_s30, 4  ;;  %s2006_s6 = smov 1   ;;  %s101_s0 = int_to_ptr.vmem [resolvable:$true] %s100_s0 }
  0x1d   :  { %106 = dma.hbm_to_vmem [thread:$0]  %s99_s22, 32, %s101_s0, [#allocation9], %s2005_s5, %s2005_s5, %s2006_s6  }
  0x1e   :  { %1991 = dma.done.wait [#allocation3], 128  }
  0x1f   :  { %1992 = vsyncadd [#allocation3], 4294967168 }
  0x20   :  { %1993 = dma.done.wait [#allocation6], 640  }
  0x21   :  { %1994 = vsyncadd [#allocation6], 4294966656 }
  0x22   :  { %1995 = dma.done.wait [#allocation9], 32  }
  0x23   :  { %1996 = vsyncadd [#allocation9], 4294967264  ;;  %v2007_v0 = vmov 0   ;;  %s2504_s24 = sld [smem:[#allocation15_spill]]  ;;  %v134_v12 = vlaneseq  ;;  %v2008_v15 = vmov 1.0|1.0  }
  0x24   :  { %1789 = vset.pattern.permute.xlu0 %v2007_v0  ;;  %s2505_s2 = sld [smem:[#allocation18_spill]]  ;;  %v1749_v18 = vld [vmem:[%s2474_s8 + $0x8] sm:$0xff]  ;;  %v1748_v21 = vld [vmem:[%s2474_s8] sm:$0xff]  ;;  %vm250_vm3 = vcmask 261120   ;;  %vm342_vm4 = vcmask 130048   ;;  %s2009_s23 = smov 112  }
  0x25   :  { %v135_v13 = vand.u32 127, %v134_v12  ;;  %s2506_s3 = sld [smem:[#allocation19_spill]]  ;;  %328 = vmatpush.bf16.msra.mxu3 %v1749_v18  ;;  %v165_v23 = vld [vmem:[#allocation5] sm:$0xff]  ;;  %v1801_v32 = vld [vmem:[%s2473_s7] ss:$0 sm:$0xff]  ;;  %vm409_vm5 = vcmask 1043456  }
  0x26   :  { %s2507_s4 = sld [smem:[#allocation21_spill]]  ;;  %v1802_v33 = vld [vmem:[%s2475_s9] ss:$0 sm:$0xff]  ;;  %vm381_vm6 = vcmask 64512   ;;  %vm765_vm14 = vcmask 523264  }
  0x27   :  { %s2508_s26 = sld [smem:[#allocation20_spill]]  ;;  %v2227_v0 = vld [vmem:[#allocation2] sm:$0xff] }
  0x29   :  { %v132_v1 = vld [vmem:[%s2504_s24] sm:$0xff]  ;;  %v133_v4 = vld [vmem:[%s2504_s24 + $0x8] sm:$0xff]  ;;  %329 = vmatpush.bf16.msra.mxu3 %v1748_v21 }
  0x2a   :  { %v1743_v2 = vld [vmem:[%s2505_s2 + $0x38] sm:$0xff]  ;;  %137 = vperm.xlu0 %1789, %v132_v1   ;;  %v1742_v3 = vld [vmem:[%s2505_s2 + $0x30] sm:$0xff]  ;;  %v1741_v5 = vld [vmem:[%s2505_s2 + $0x28] sm:$0xff] }
  0x2b   :  { %214 = vmatpush.bf16.msra.mxu0 %v1743_v2  ;;  %v1740_v6 = vld [vmem:[%s2505_s2 + $0x20] sm:$0xff]  ;;  %v1739_v7 = vld [vmem:[%s2505_s2 + $0x18] sm:$0xff]  ;;  %v1738_v8 = vld [vmem:[%s2505_s2 + $0x10] sm:$0xff] }
  0x2c   :  { %v1737_v9 = vld [vmem:[%s2505_s2 + $0x8] sm:$0xff]  ;;  %v1736_v10 = vld [vmem:[%s2505_s2] sm:$0xff] }
  0x2d   :  { %v1745_v16 = vld [vmem:[%s2506_s3 + $0x8] sm:$0xff]  ;;  %v1744_v19 = vld [vmem:[%s2506_s3] sm:$0xff] }
  0x2e   :  { %v1747_v17 = vld [vmem:[%s2507_s4 + $0x8] sm:$0xff]  ;;  %260 = vmatpush.bf16.msra.mxu1 %v1745_v16  ;;  %v1746_v20 = vld [vmem:[%s2507_s4] sm:$0xff] }
  0x2f   :  { %215 = vmatpush.bf16.msra.mxu0 %v1742_v3  ;;  %294 = vmatpush.bf16.msra.mxu2 %v1747_v17  ;;  %v1800_v28 = vld [vmem:[%s2508_s26] ss:$0 sm:$0xff] }
  0x32   :  { %140 = vperm.xlu0 %1789, %v133_v4   ;;  %261 = vmatpush.bf16.msra.mxu1 %v1744_v19 }
  0x33   :  { %216 = vmatpush.bf16.msra.mxu0 %v1741_v5  ;;  %295 = vmatpush.bf16.msra.mxu2 %v1746_v20 }
  0x37   :  { %217 = vmatpush.bf16.msra.mxu0 %v1740_v6 }
  0x3b   :  { %218 = vmatpush.bf16.msra.mxu0 %v1739_v7 }
  0x3f   :  { %219 = vmatpush.bf16.msra.mxu0 %v1738_v8 }
  0x43   :  { %220 = vmatpush.bf16.msra.mxu0 %v1737_v9 }
  0x47   :  { %221 = vmatpush.bf16.msra.mxu0 %v1736_v10 }
  0x9c   :  { %v138_v11 = vpop.permute.xlu0 %137 }
  0x9d   :  { %vm142_vm0 = vcmp.eq.s32.totalorder %v138_v11, %v135_v13 }
  0xa4   :  { %v141_v14 = vpop.permute.xlu0 %140 }
  0xa5   :  { %vm143_vm1 = vcmp.eq.s32.totalorder %v141_v14, %v135_v13 }
  0xa6   :  { %vm1552_vm2 = vmpackc.low %vm143_vm1, %vm142_vm0 }
  0xa7   :  { %1553 = vmatmul.msk.bf16.vlgmr.msra.gmra.mxu0 %vm1552_vm2, %v2008_v15 }
 0x124   :  { %v223_v22 = vpop.f32.mrf.mxu0 }
 0x125   :  { %v2191_v25 = vadd.f32 %v223_v22, %v165_v23 }
 0x12c   :  { %v225_v24 = vpop.f32.mrf.mxu0 }
 0x12d   :  { %v2193_v26 = vadd.f32 %v225_v24, %v165_v23 }
 0x12f   :  { %v229_v27 = vpack.c.bf16 %v2193_v26, %v2191_v25 }
 0x131   :  { %1562 = vmatmul.msk.bf16.vlgmr.msra.gmra.mxu1 %vm250_vm3, %v229_v27  ;;  %1571 = vmatmul.msk.bf16.vlgmr.msra.gmra.mxu2 %vm250_vm3, %v229_v27 }
 0x132   :  { %1580 = vmatmul.msk.bf16.vlgmr.msra.gmra.mxu3 %vm250_vm3, %v229_v27 }
 0x1ae   :  { %v263_v29 = vpop.f32.mrf.mxu1 }
 0x1af   :  { %v264_v30 = vadd.f32 %v1800_v28, %v263_v29 }
 0x1b1   :  { %v336_v31 = vpack.c.bf16 %v264_v30, %v264_v30 }
 0x1b3   :  { %v446_v34 = vunpack.c.l.b16 %v336_v31 }
 0x1b4   :  { %v297_v35 = vpop.f32.mrf.mxu2 }
 0x1b5   :  { %v447_v36 = vpack.c.b16 %v446_v34, %v446_v34  ;;  %v298_v37 = vadd.f32 %v1801_v32, %v297_v35  ;;  %v331_v38 = vpop.f32.mrf.mxu3 }
 0x1b6   :  { %v332_v39 = vadd.f32 %v1802_v33, %v331_v38  ;;  %v265_v51 = vpop.f32.mrf.mxu1 }
 0x1b7   :  { %v338_v40 = vpack.c.bf16 %v298_v37, %v298_v37  ;;  %448 = vrot.lane.b32.xlu0 %v447_v36, %s2009_s23  ;;  %v266_v56 = vadd.f32 %v1800_v28, %v265_v51 }
 0x1b8   :  { %v2210_v41 = vpack.c.bf16 %v332_v39, %v332_v39 }
 0x1b9   :  { %v347_v42 = vsel %vm342_vm4, %v338_v40, 0  ;;  %v451_v43 = vunpack.c.l.b16 %v338_v40  ;;  %v337_v58 = vpack.c.bf16 %v266_v56, %v266_v56 }
 0x1ba   :  { %356 = vmatpush.bf16.xpose.msrb.mxu1 %v347_v42  ;;  %v411_v44 = vsel %vm409_vm5, %v2210_v41, 0  ;;  %v528_v36 = vunpack.c.l.b16 %v2210_v41 }
 0x1bb   :  { %420 = vmatpush.bf16.msrb.mxu3 %v411_v44  ;;  %v452_v45 = vpack.c.b16 %v451_v43, %v451_v43  ;;  %v475_v23 = vunpack.c.l.b16 %v337_v58 }
 0x1bc   :  { %v299_v46 = vpop.f32.mrf.mxu2  ;;  %v529_v38 = vpack.c.b16 %v528_v36, %v528_v36 }
 0x1bd   :  { %v300_v47 = vadd.f32 %v1801_v32, %v299_v46  ;;  %v333_v48 = vpop.f32.mrf.mxu3  ;;  %453 = vrot.lane.b32.xlu2 %v452_v45, %s2009_s23  ;;  %v476_v24 = vpack.c.b16 %v475_v23, %v475_v23 }
 0x1be   :  { %v334_v49 = vadd.f32 %v1802_v33, %v333_v48 }
 0x1bf   :  { %v339_v50 = vpack.c.bf16 %v300_v47, %v300_v47 }
 0x1c0   :  { %v2216_v52 = vpack.c.bf16 %v334_v49, %v334_v49 }
 0x1c1   :  { %v480_v53 = vunpack.c.l.b16 %v339_v50  ;;  %1581 = vmatmul.msk.bf16.vlgmr.msrb.gmra.mxu1 %vm342_vm4, %v336_v31  ;;  %v366_v54 = vsel %vm342_vm4, %v339_v50, 0 }
 0x1c2   :  { %v430_v55 = vsel %vm409_vm5, %v2216_v52, 0  ;;  %375 = vmatpush.bf16.xpose.msrb.mxu2 %v366_v54 }
 0x1c3   :  { %v481_v57 = vpack.c.b16 %v480_v53, %v480_v53  ;;  %439 = vmatpush.bf16.msra.mxu1 %v430_v55 }
 0x1c5   :  { %482 = vrot.lane.b32.xlu2 %v481_v57, %s2009_s23 }
 0x1c9   :  { %1582 = vmatmul.msk.bf16.vlgmr.msrb.gmra.mxu2 %vm342_vm4, %v337_v58 }
 0x217   :  { %v454_v59 = vpop.permute.xlu2 %453 }
 0x218   :  { %v459_v60 = vsel %vm342_vm4, %v454_v59, 0 }
 0x219   :  { %468 = vmatpush.bf16.xpose.msra.mxu2 %v459_v60 }
 0x21f   :  { %v483_v61 = vpop.permute.xlu2 %482 }
 0x220   :  { %v488_v62 = vsel %vm342_vm4, %v483_v61, 0 }
 0x221   :  { %497 = vmatpush.bf16.xpose.msra.mxu3 %v488_v62 }
 0x229   :  { %v449_v63 = vpop.permute.xlu0 %448 }
 0x22a   :  { %1585 = vmatmul.msk.bf16.vlgmr.msra.gmra.mxu2 %vm342_vm4, %v449_v63 }
 0x23e   :  { %v358_v1 = vpop.f32.mrf.mxu1 }
 0x23f   :  { %v359_v2 = vadd.f32 %v358_v1, %v2227_v0 }
 0x241   :  { %v382_v3 = vsel %vm381_vm6, %v359_v2, -inf }
 0x242   :  { %383 = vmax.xlane.f32.xlu1 %v382_v3 }
 0x246   :  { %v360_v4 = vpop.f32.mrf.mxu1 }
 0x24c   :  { %v377_v5 = vpop.f32.mrf.mxu2 }
 0x24d   :  { %v378_v6 = vadd.f32 %v377_v5, %v2227_v0 }
 0x24f   :  { %v385_v7 = vsel %vm381_vm6, %v378_v6, -inf }
 0x250   :  { %386 = vmax.xlane.f32.xlu2 %v385_v7 }
 0x254   :  { %v379_v8 = vpop.f32.mrf.mxu2 }
 0x2ad   :  { %v470_v9 = vpop.f32.mrf.mxu2 }
 0x2ae   :  { %v471_v10 = vadd.f32 %v470_v9, %v2227_v0 }
 0x2b0   :  { %v503_v11 = vsel %vm381_vm6, %v471_v10, -inf }
 0x2b1   :  { %504 = vmax.xlane.f32.xlu0 %v503_v11 }
 0x2b5   :  { %v472_v12 = vpop.f32.mrf.mxu2  ;;  %v384_v13 = vpop.xlane.xlu1 %383 }
 0x2b6   :  { %v388_v14 = vsub.f32 %v359_v2, %v384_v13  ;;  %v552_v2 = vunpack.c.l.b16 %v2216_v52  ;;  %v1750_v13 = vld [vmem:[%s2476_s10] sm:$0xff] }
 0x2b8   :  { %v390_v15 = vmul.f32 1.442695, %v388_v14  ;;  %v553_v3 = vpack.c.b16 %v552_v2, %v552_v2 }
 0x2ba   :  { %1821 = vpow2.f32 %v390_v15 }
 0x2c0   :  { %v1822_v16 = vpop.eup %1821 }
 0x2c1   :  { %v394_v17 = vsel %vm381_vm6, %v1822_v16, 0.0 }
 0x2c2   :  { %395 = vadd.xlane.f32.xlu1 %v394_v17 }
 0x2c3   :  { %v387_v18 = vpop.xlane.xlu2 %386 }
 0x2c4   :  { %v389_v19 = vsub.f32 %v378_v6, %v387_v18 }
 0x2c6   :  { %v392_v20 = vmul.f32 1.442695, %v389_v19 }
 0x2c8   :  { %1823 = vpow2.f32 %v392_v20  ;;  %v1803_v20 = vld [vmem:[%s2477_s11] ss:$0 sm:$0xff] }
 0x2ce   :  { %v1824_v21 = vpop.eup %1823 }
 0x2cf   :  { %v397_v22 = vsel %vm381_vm6, %v1824_v21, 0.0 }
 0x2d0   :  { %398 = vadd.xlane.f32.xlu2 %v397_v22 }
 0x2db   :  { %477 = vrot.lane.b32.xlu1 %v476_v24, %s2009_s23 }
 0x324   :  { %v505_v27 = vpop.xlane.xlu0 %504 }
 0x325   :  { %v509_v28 = vsub.f32 %v471_v10, %v505_v27  ;;  %v1751_v10 = vld [vmem:[%s2476_s10 + $0x8] sm:$0xff] }
 0x326   :  { %615 = vmatpush.bf16.msrb.mxu2 %v1751_v10 }
 0x327   :  { %v511_v29 = vmul.f32 1.442695, %v509_v28 }
 0x329   :  { %1825 = vpow2.f32 %v511_v29 }
 0x32a   :  { %616 = vmatpush.bf16.msrb.mxu2 %v1750_v13 }
 0x32f   :  { %v1826_v30 = vpop.eup %1825 }
 0x330   :  { %v515_v31 = vsel %vm381_vm6, %v1826_v30, 0.0 }
 0x331   :  { %516 = vadd.xlane.f32.xlu2 %v515_v31  ;;  %v2010_v31 = vmov 32.0  }
 0x335   :  { %v396_v32 = vpop.xlane.xlu1 %395 }
 0x336   :  { %1827 = vrcp.f32 %v396_v32 }
 0x33c   :  { %v1828_v33 = vpop.eup %1827 }
 0x33d   :  { %v402_v34 = vmul.f32 %v1828_v33, %v1822_v16 }
 0x33f   :  { %v404_v35 = vpack.c.bf16 %v402_v34, %v402_v34 }
 0x341   :  { %1583 = vmatmul.msk.bf16.vlgmr.msrb.gmra.mxu3 %vm381_vm6, %v404_v35 }
 0x343   :  { %v399_v37 = vpop.xlane.xlu2 %398 }
 0x344   :  { %1829 = vrcp.f32 %v399_v37 }
 0x349   :  { %530 = vrot.lane.b32.xlu2 %v529_v38, %s2009_s23 }
 0x34a   :  { %v1830_v39 = vpop.eup %1829 }
 0x34b   :  { %v403_v40 = vmul.f32 %v1830_v39, %v1824_v21 }
 0x34d   :  { %v405_v42 = vpack.c.bf16 %v403_v40, %v403_v40  ;;  %v478_v43 = vpop.permute.xlu1 %477 }
 0x34f   :  { %1584 = vmatmul.msk.bf16.vlgmr.msra.gmra.mxu1 %vm381_vm6, %v405_v42 }
 0x351   :  { %1586 = vmatmul.msk.bf16.vlgmr.msra.gmra.mxu3 %vm342_vm4, %v478_v43 }
 0x3a4   :  { %v517_v44 = vpop.xlane.xlu2 %516 }
 0x3a5   :  { %1831 = vrcp.f32 %v517_v44 }
 0x3ab   :  { %v1832_v45 = vpop.eup %1831 }
 0x3ac   :  { %v523_v46 = vmul.f32 %v1832_v45, %v1826_v30  ;;  %v531_v47 = vpop.permute.xlu2 %530 }
 0x3ad   :  { %v536_v41 = vsel %vm409_vm5, %v531_v47, 0  ;;  %v1753_v47 = vld [vmem:[#allocation7 + $0x8] sm:$0xff] }
 0x3ae   :  { %545 = vmatpush.bf16.msrb.mxu0 %v536_v41  ;;  %v525_v48 = vpack.c.bf16 %v523_v46, %v523_v46  ;;  %718 = vmatpush.bf16.msrb.mxu3 %v1753_v47  ;;  %v1759_v47 = vld [vmem:[%s2506_s3 + $0x18] sm:$0xff] }
 0x3b1   :  { %1587 = vmatmul.msk.bf16.vlgmr.msrb.gmra.mxu0 %vm381_vm6, %v525_v48 }
 0x3c4   :  { %v422_v49 = vpop.f32.mrf.mxu3 }
 0x3cc   :  { %v424_v50 = vpop.f32.mrf.mxu3  ;;  %v441_v51 = vpop.f32.mrf.mxu1 }
 0x3cd   :  { %v1752_v50 = vld [vmem:[#allocation7] sm:$0xff] }
 0x3ce   :  { %719 = vmatpush.bf16.msrb.mxu3 %v1752_v50 }
 0x3d4   :  { %v443_v53 = vpop.f32.mrf.mxu1  ;;  %v499_v54 = vpop.f32.mrf.mxu3 }
 0x3d5   :  { %v500_v55 = vadd.f32 %v499_v54, %v2227_v0 }
 0x3d7   :  { %v506_v56 = vsel %vm381_vm6, %v500_v55, -inf }
 0x3d8   :  { %507 = vmax.xlane.f32.xlu1 %v506_v56 }
 0x3dc   :  { %v501_v57 = vpop.f32.mrf.mxu3 }
 0x42e   :  { %v547_v58 = vpop.f32.mrf.mxu0 }
 0x436   :  { %v549_v59 = vpop.f32.mrf.mxu0 }
 0x44b   :  { %v508_v60 = vpop.xlane.xlu1 %507 }
 0x44c   :  { %v510_v61 = vsub.f32 %v500_v55, %v508_v60 }
 0x44e   :  { %v513_v62 = vmul.f32 1.442695, %v510_v61 }
 0x450   :  { %1833 = vpow2.f32 %v513_v62 }
 0x456   :  { %v1834_v63 = vpop.eup %1833 }
 0x457   :  { %v518_v1 = vsel %vm381_vm6, %v1834_v63, 0.0 }
 0x458   :  { %519 = vadd.xlane.f32.xlu0 %v518_v1 }
 0x46c   :  { %554 = vrot.lane.b32.xlu0 %v553_v3, %s2009_s23 }
 0x4cb   :  { %v520_v4 = vpop.xlane.xlu0 %519 }
 0x4cc   :  { %1835 = vrcp.f32 %v520_v4  ;;  %v1804_v4 = vld [vmem:[%s2478_s12] ss:$0 sm:$0xff] }
 0x4cd   :  { %1837 = vrcp.f32 %v2010_v31 }
 0x4d2   :  { %v1836_v5 = vpop.eup %1835 }
 0x4d3   :  { %v524_v6 = vmul.f32 %v1836_v5, %v1834_v63  ;;  %v1838_v32 = vpop.eup %1837 }
 0x4d4   :  { %v634_v33 = vmul.f32 32.0, %v1838_v32  ;;  %vm638_vm7 = vweird.f32 %v1838_v32 }
 0x4d5   :  { %v526_v9 = vpack.c.bf16 %v524_v6, %v524_v6 }
 0x4d6   :  { %v635_v34 = vsub.f32 1.0, %v634_v33 }
 0x4d8   :  { %v636_v35 = vmul.f32 %v1838_v32, %v635_v34 }
 0x4da   :  { %v637_v36 = vadd.f32 %v1838_v32, %v636_v35 }
 0x4dc   :  { %v2270_v37 = vsel %vm638_vm7, %v1838_v32, %v637_v36 }
 0x4de   :  { %v555_v7 = vpop.permute.xlu0 %554 }
 0x4df   :  { %v560_v8 = vsel %vm409_vm5, %v555_v7, 0 }
 0x4e0   :  { %569 = vmatpush.bf16.msrb.mxu1 %v560_v8  ;;  %v1805_v8 = vld [vmem:[%s2479_s13] ss:$0 sm:$0xff] }
 0x4e3   :  { %1588 = vmatmul.msk.bf16.vlgmr.msrb.gmra.mxu1 %vm381_vm6, %v526_v9 }
 0x4e4   :  { %873 = vmatpush.bf16.msra.mxu1 %v1759_v47 }
 0x560   :  { %v571_v52 = vpop.f32.mrf.mxu1 }
 0x561   :  { %v1790_v11 = vpack.i.bf16 %v571_v52, %v547_v58 }
 0x563   :  { %1791 = vrot.lane.b32.xlu1 %v1790_v11, %s2005_s5 }
 0x568   :  { %v573_v12 = vpop.f32.mrf.mxu1 }
 0x5d5   :  { %v1792_v14 = vpop.permute.xlu1 %1791 }
 0x5d6   :  { %v1794_v15 = vunpack.i.h.bf16 %v1792_v14  ;;  %v1793_v16 = vunpack.i.l.bf16 %v1792_v14  ;;  %v1757_v14 = vld [vmem:[%s2482_s16 + $0x18] sm:$0xff] }
 0x5d7   :  { %773 = vmatpush.bf16.msra.mxu0 %v1757_v14 }
 0x5d8   :  { %v584_v17 = vsel %vm342_vm4, %v441_v51, %v1794_v15  ;;  %v583_v18 = vsel %vm342_vm4, %v422_v49, %v1793_v16  ;;  %v1756_v15 = vld [vmem:[%s2482_s16 + $0x10] sm:$0xff]  ;;  %v1755_v16 = vld [vmem:[%s2482_s16 + $0x8] sm:$0xff] }
 0x5d9   :  { %v585_v19 = vpack.c.bf16 %v584_v17, %v583_v18  ;;  %v1754_v17 = vld [vmem:[%s2482_s16] sm:$0xff] }
 0x5db   :  { %1597 = vmatmul.msk.bf16.vlgmr.msrb.gmra.mxu2 %vm250_vm3, %v585_v19  ;;  %774 = vmatpush.bf16.msra.mxu0 %v1756_v15  ;;  %v1806_v19 = vld [vmem:[%s2481_s15] ss:$0 sm:$0xff] }
 0x5df   :  { %775 = vmatpush.bf16.msra.mxu0 %v1755_v16 }
 0x5e3   :  { %776 = vmatpush.bf16.msra.mxu0 %v1754_v17 }
 0x65e   :  { %v618_v21 = vpop.f32.mrf.mxu2 }
 0x65f   :  { %v619_v22 = vadd.f32 %v1803_v20, %v618_v21 }
 0x661   :  { %v623_v23 = vadd.f32 %v619_v22, %v2191_v25 }
 0x663   :  { %v627_v24 = vsel %vm250_vm3, %v623_v23, 0.0 }
 0x664   :  { %628 = vadd.xlane.f32.xlu0 %v627_v24 }
 0x666   :  { %v620_v27 = vpop.f32.mrf.mxu2 }
 0x667   :  { %v621_v28 = vadd.f32 %v1803_v20, %v620_v27 }
 0x669   :  { %v624_v29 = vadd.f32 %v621_v28, %v2193_v26  ;;  %v1807_v28 = vld [vmem:[#allocation8] ss:$0 sm:$0xff] }
 0x66b   :  { %v630_v30 = vsel %vm250_vm3, %v624_v29, 0.0 }
 0x66c   :  { %631 = vadd.xlane.f32.xlu2 %v630_v30 }
 0x6d7   :  { %v629_v25 = vpop.xlane.xlu0 %628 }
 0x6d8   :  { %v640_v38 = vmul.f32 %v2270_v37, %v629_v25 }
 0x6da   :  { %v642_v39 = vsub.f32 %v623_v23, %v640_v38 }
 0x6dc   :  { %v644_v40 = vmul.f32 %v642_v39, %v642_v39 }
 0x6de   :  { %v646_v26 = vsel %vm250_vm3, %v644_v40, 0.0 }
 0x6df   :  { %v632_v42 = vpop.xlane.xlu2 %631  ;;  %647 = vadd.xlane.f32.xlu1 %v646_v26 }
 0x6e0   :  { %v641_v43 = vmul.f32 %v2270_v37, %v632_v42 }
 0x6e2   :  { %v643_v44 = vsub.f32 %v624_v29, %v641_v43 }
 0x6e4   :  { %v645_v45 = vmul.f32 %v643_v44, %v643_v44 }
 0x6e6   :  { %v649_v46 = vsel %vm250_vm3, %v645_v45, 0.0 }
 0x6e7   :  { %650 = vadd.xlane.f32.xlu0 %v649_v46 }
 0x752   :  { %v648_v41 = vpop.xlane.xlu1 %647 }
 0x753   :  { %v652_v48 = vmul.f32 %v648_v41, %v2270_v37  ;;  %v1761_v41 = vld [vmem:[%s2507_s4 + $0x18] sm:$0xff] }
 0x754   :  { %909 = vmatpush.bf16.msra.mxu2 %v1761_v41 }
 0x755   :  { %v654_v49 = vadd.f32 1e-05, %v652_v48  ;;  %v1763_v48 = vld [vmem:[%s2474_s8 + $0x18] sm:$0xff] }
 0x756   :  { %945 = vmatpush.bf16.msra.mxu3 %v1763_v48 }
 0x757   :  { %1839 = vrsqrt.f32 %v654_v49  ;;  %vm662_vm9 = vweird.f32 %v654_v49 }
 0x75a   :  { %v651_v51 = vpop.xlane.xlu0 %650 }
 0x75b   :  { %v653_v53 = vmul.f32 %v651_v51, %v2270_v37 }
 0x75d   :  { %v1840_v54 = vpop.eup %1839  ;;  %v655_v55 = vadd.f32 1e-05, %v653_v53  ;;  %v1758_v53 = vld [vmem:[%s2506_s3 + $0x10] sm:$0xff] }
 0x75e   :  { %v657_v56 = vmul.f32 %v1840_v54, %v654_v49  ;;  %vm663_vm8 = vweird.f32 %v1840_v54  ;;  %874 = vmatpush.bf16.msra.mxu1 %v1758_v53 }
 0x75f   :  { %1841 = vrsqrt.f32 %v655_v55  ;;  %vm664_vm10 = vmor %vm662_vm9, %vm663_vm8  ;;  %vm672_vm12 = vweird.f32 %v655_v55 }
 0x760   :  { %v658_v57 = vmul.f32 %v1840_v54, %v657_v56 }
 0x762   :  { %v659_v58 = vmul.f32 0.5, %v658_v57 }
 0x764   :  { %v660_v59 = vsub.f32 1.5, %v659_v58 }
 0x765   :  { %v1842_v60 = vpop.eup %1841 }
 0x766   :  { %v661_v61 = vmul.f32 %v1840_v54, %v660_v59  ;;  %v667_v62 = vmul.f32 %v1842_v60, %v655_v55  ;;  %vm673_vm11 = vweird.f32 %v1842_v60  ;;  %v1762_v55 = vld [vmem:[%s2474_s8 + $0x10] sm:$0xff] }
 0x767   :  { %vm674_vm13 = vmor %vm672_vm12, %vm673_vm11  ;;  %946 = vmatpush.bf16.msra.mxu3 %v1762_v55 }
 0x768   :  { %v668_v63 = vmul.f32 %v1842_v60, %v667_v62  ;;  %v665_v1 = vsel %vm664_vm10, %v1840_v54, %v661_v61  ;;  %v1760_v54 = vld [vmem:[%s2507_s4 + $0x10] sm:$0xff] }
 0x769   :  { %v676_v5 = vmul.f32 %v665_v1, %v642_v39  ;;  %910 = vmatpush.bf16.msra.mxu2 %v1760_v54 }
 0x76a   :  { %v669_v2 = vmul.f32 0.5, %v668_v63 }
 0x76b   :  { %v681_v9 = vmul.f32 %v1804_v4, %v676_v5 }
 0x76c   :  { %v670_v3 = vsub.f32 1.5, %v669_v2 }
 0x76d   :  { %v686_v11 = vadd.f32 %v1805_v8, %v681_v9 }
 0x76e   :  { %v671_v6 = vmul.f32 %v1842_v60, %v670_v3 }
 0x770   :  { %v675_v7 = vsel %vm674_vm13, %v1842_v60, %v671_v6 }
 0x771   :  { %v677_v10 = vmul.f32 %v675_v7, %v643_v44 }
 0x773   :  { %v682_v52 = vmul.f32 %v1804_v4, %v677_v10 }
 0x775   :  { %v687_v12 = vadd.f32 %v1805_v8, %v682_v52  ;;  %v1808_v8 = vld [vmem:[%s2484_s18] ss:$0 sm:$0xff] }
 0x777   :  { %v688_v13 = vpack.c.bf16 %v687_v12, %v686_v11 }
 0x779   :  { %1606 = vmatmul.msk.bf16.vlgmr.msrb.gmra.mxu3 %vm250_vm3, %v688_v13 }
 0x7fc   :  { %v721_v18 = vpop.f32.mrf.mxu3 }
 0x7fd   :  { %v722_v20 = vadd.f32 %v1806_v19, %v721_v18  ;;  %v1810_v18 = vld [vmem:[%s2508_s26 + $0x1] ss:$0 sm:$0xff] }
 0x7ff   :  { %v726_v23 = vmax.f32 %v722_v20, 0.0 }
 0x804   :  { %v723_v21 = vpop.f32.mrf.mxu3 }
 0x805   :  { %v724_v22 = vadd.f32 %v1806_v19, %v723_v21 }
 0x807   :  { %v727_v24 = vmax.f32 %v724_v22, 0.0  ;;  %v1811_v22 = vld [vmem:[%s2473_s7 + $0x1] ss:$0 sm:$0xff] }
 0x809   :  { %v728_v27 = vpack.c.bf16 %v727_v24, %v726_v23  ;;  %v1812_v23 = vld [vmem:[%s2475_s9 + $0x1] ss:$0 sm:$0xff] }
 0x80b   :  { %1623 = vmatmul.msk.bf16.vlgmr.msra.gmra.mxu0 %vm765_vm14, %v728_v27 }
 0x888   :  { %v778_v29 = vpop.f32.mrf.mxu0 }
 0x889   :  { %v779_v30 = vadd.f32 %v1807_v28, %v778_v29 }
 0x88b   :  { %v783_v31 = vadd.f32 %v779_v30, %v686_v11  ;;  %v1809_v11 = vld [vmem:[%s2485_s19] ss:$0 sm:$0xff] }
 0x88d   :  { %v787_v32 = vsel %vm250_vm3, %v783_v31, 0.0 }
 0x88e   :  { %788 = vadd.xlane.f32.xlu2 %v787_v32 }
 0x890   :  { %v780_v33 = vpop.f32.mrf.mxu0 }
 0x891   :  { %v781_v34 = vadd.f32 %v1807_v28, %v780_v33 }
 0x893   :  { %v784_v35 = vadd.f32 %v781_v34, %v687_v12 }
 0x895   :  { %v790_v36 = vsel %vm250_vm3, %v784_v35, 0.0 }
 0x896   :  { %791 = vadd.xlane.f32.xlu0 %v790_v36 }
 0x901   :  { %v789_v25 = vpop.xlane.xlu2 %788 }
 0x902   :  { %v793_v38 = vmul.f32 %v789_v25, %v2270_v37 }
 0x904   :  { %v795_v39 = vsub.f32 %v783_v31, %v793_v38 }
 0x906   :  { %v797_v40 = vmul.f32 %v795_v39, %v795_v39 }
 0x908   :  { %v799_v26 = vsel %vm250_vm3, %v797_v40, 0.0 }
 0x909   :  { %v792_v42 = vpop.xlane.xlu0 %791  ;;  %800 = vadd.xlane.f32.xlu2 %v799_v26 }
 0x90a   :  { %v794_v43 = vmul.f32 %v792_v42, %v2270_v37 }
 0x90c   :  { %v796_v44 = vsub.f32 %v784_v35, %v794_v43 }
 0x90e   :  { %v798_v45 = vmul.f32 %v796_v44, %v796_v44 }
 0x910   :  { %v802_v46 = vsel %vm250_vm3, %v798_v45, 0.0 }
 0x911   :  { %803 = vadd.xlane.f32.xlu1 %v802_v46 }
 0x97c   :  { %v801_v49 = vpop.xlane.xlu2 %800 }
 0x97d   :  { %v805_v50 = vmul.f32 %v801_v49, %v2270_v37 }
 0x97f   :  { %v807_v51 = vadd.f32 1e-05, %v805_v50 }
 0x981   :  { %1843 = vrsqrt.f32 %v807_v51  ;;  %vm815_vm0 = vweird.f32 %v807_v51 }
 0x984   :  { %v804_v56 = vpop.xlane.xlu1 %803 }
 0x985   :  { %v806_v57 = vmul.f32 %v804_v56, %v2270_v37 }
 0x987   :  { %v1844_v58 = vpop.eup %1843  ;;  %v808_v59 = vadd.f32 1e-05, %v806_v57 }
 0x988   :  { %v810_v60 = vmul.f32 %v1844_v58, %v807_v51  ;;  %vm816_vm15 = vweird.f32 %v1844_v58 }
 0x989   :  { %1845 = vrsqrt.f32 %v808_v59  ;;  %vm817_vm1 = vmor %vm815_vm0, %vm816_vm15  ;;  %vm825_vm7 = vweird.f32 %v808_v59 }
 0x98a   :  { %v811_v61 = vmul.f32 %v1844_v58, %v810_v60 }
 0x98c   :  { %v812_v62 = vmul.f32 0.5, %v811_v61 }
 0x98e   :  { %v813_v63 = vsub.f32 1.5, %v812_v62 }
 0x98f   :  { %v1846_v1 = vpop.eup %1845 }
 0x990   :  { %v814_v2 = vmul.f32 %v1844_v58, %v813_v63  ;;  %v820_v3 = vmul.f32 %v1846_v1, %v808_v59  ;;  %vm826_vm2 = vweird.f32 %v1846_v1 }
 0x991   :  { %vm827_vm8 = vmor %vm825_vm7, %vm826_vm2 }
 0x992   :  { %v821_v4 = vmul.f32 %v1846_v1, %v820_v3  ;;  %v818_v5 = vsel %vm817_vm1, %v1844_v58, %v814_v2 }
 0x993   :  { %v829_v9 = vmul.f32 %v818_v5, %v795_v39 }
 0x994   :  { %v822_v6 = vmul.f32 0.5, %v821_v4 }
 0x995   :  { %v834_v12 = vmul.f32 %v1808_v8, %v829_v9 }
 0x996   :  { %v823_v7 = vsub.f32 1.5, %v822_v6 }
 0x997   :  { %v2333_v15 = vadd.f32 %v1809_v11, %v834_v12 }
 0x998   :  { %v824_v10 = vmul.f32 %v1846_v1, %v823_v7 }
 0x99a   :  { %v828_v52 = vsel %vm827_vm8, %v1846_v1, %v824_v10 }
 0x99b   :  { %v830_v13 = vmul.f32 %v828_v52, %v796_v44 }
 0x99d   :  { %v835_v14 = vmul.f32 %v1808_v8, %v830_v13 }
 0x99f   :  { %v2335_v16 = vadd.f32 %v1809_v11, %v835_v14 }
 0x9a1   :  { %v841_v17 = vpack.c.bf16 %v2335_v16, %v2333_v15 }
 0x9a3   :  { %1637 = vmatmul.msk.bf16.vlgmr.msra.gmra.mxu1 %vm250_vm3, %v841_v17  ;;  %1651 = vmatmul.msk.bf16.vlgmr.msra.gmra.mxu2 %vm250_vm3, %v841_v17 }
 0x9a4   :  { %1665 = vmatmul.msk.bf16.vlgmr.msra.gmra.mxu3 %vm250_vm3, %v841_v17 }
 0xa20   :  { %v876_v19 = vpop.f32.mrf.mxu1 }
 0xa21   :  { %v877_v20 = vadd.f32 %v1810_v18, %v876_v19 }
 0xa23   :  { %v953_v21 = vpack.c.bf16 %v877_v20, %v877_v20 }
 0xa25   :  { %v1060_v24 = vunpack.c.l.b16 %v953_v21 }
 0xa26   :  { %v912_v27 = vpop.f32.mrf.mxu2 }
 0xa27   :  { %v1061_v28 = vpack.c.b16 %v1060_v24, %v1060_v24  ;;  %v913_v29 = vadd.f32 %v1811_v22, %v912_v27  ;;  %v948_v30 = vpop.f32.mrf.mxu3 }
 0xa28   :  { %v949_v31 = vadd.f32 %v1812_v23, %v948_v30  ;;  %v878_v32 = vpop.f32.mrf.mxu1 }
 0xa29   :  { %v955_v33 = vpack.c.bf16 %v913_v29, %v913_v29  ;;  %v879_v34 = vadd.f32 %v1810_v18, %v878_v32  ;;  %1062 = vrot.lane.b32.xlu1 %v1061_v28, %s2009_s23 }
 0xa2a   :  { %v2352_v35 = vpack.c.bf16 %v949_v31, %v949_v31 }
 0xa2b   :  { %v963_v36 = vsel %vm342_vm4, %v955_v33, 0  ;;  %v1065_v25 = vunpack.c.l.b16 %v955_v33  ;;  %v954_v40 = vpack.c.bf16 %v879_v34, %v879_v34 }
 0xa2c   :  { %v1025_v38 = vsel %vm409_vm5, %v2352_v35, 0  ;;  %972 = vmatpush.bf16.xpose.msrb.mxu0 %v963_v36 }
 0xa2d   :  { %v1066_v39 = vpack.c.b16 %v1065_v25, %v1065_v25  ;;  %1034 = vmatpush.bf16.msrb.mxu2 %v1025_v38  ;;  %v1089_v45 = vunpack.c.l.b16 %v954_v40 }
 0xa2e   :  { %v914_v26 = vpop.f32.mrf.mxu2 }
 0xa2f   :  { %v915_v42 = vadd.f32 %v1811_v22, %v914_v26  ;;  %v950_v43 = vpop.f32.mrf.mxu3  ;;  %1067 = vrot.lane.b32.xlu0 %v1066_v39, %s2009_s23  ;;  %v1090_v50 = vpack.c.b16 %v1089_v45, %v1089_v45  ;;  %v1142_v22 = vunpack.c.l.b16 %v2352_v35 }
 0xa30   :  { %v951_v44 = vadd.f32 %v1812_v23, %v950_v43 }
 0xa31   :  { %v956_v46 = vpack.c.bf16 %v915_v42, %v915_v42  ;;  %v1143_v23 = vpack.c.b16 %v1142_v22, %v1142_v22 }
 0xa32   :  { %v2358_v47 = vpack.c.bf16 %v951_v44, %v951_v44 }
 0xa33   :  { %v982_v41 = vsel %vm342_vm4, %v956_v46, 0  ;;  %v1094_v48 = vunpack.c.l.b16 %v956_v46  ;;  %1666 = vmatmul.msk.bf16.vlgmr.msrb.gmra.mxu0 %vm342_vm4, %v953_v21 }
 0xa34   :  { %v1044_v49 = vsel %vm409_vm5, %v2358_v47, 0  ;;  %991 = vmatpush.bf16.xpose.msrb.mxu1 %v982_v41  ;;  %v1166_v44 = vunpack.c.l.b16 %v2358_v47 }
 0xa35   :  { %v1095_v51 = vpack.c.b16 %v1094_v48, %v1094_v48  ;;  %1053 = vmatpush.bf16.msrb.mxu3 %v1044_v49 }
 0xa36   :  { %v1167_v45 = vpack.c.b16 %v1166_v44, %v1166_v44 }
 0xa37   :  { %1096 = vrot.lane.b32.xlu2 %v1095_v51, %s2009_s23  ;;  %1091 = vrot.lane.b32.xlu0 %v1090_v50, %s2009_s23 }
 0xa3b   :  { %1667 = vmatmul.msk.bf16.vlgmr.msrb.gmra.mxu1 %vm342_vm4, %v954_v40 }
 0xa91   :  { %v1097_v53 = vpop.permute.xlu2 %1096 }
 0xa92   :  { %v1102_v54 = vsel %vm342_vm4, %v1097_v53, 0 }
 0xa93   :  { %1111 = vmatpush.bf16.xpose.msra.mxu1 %v1102_v54 }
 0xa9b   :  { %v1063_v57 = vpop.permute.xlu1 %1062 }
 0xaa1   :  { %v1068_v55 = vpop.permute.xlu0 %1067 }
 0xaa2   :  { %v1073_v56 = vsel %vm342_vm4, %v1068_v55, 0 }
 0xaa3   :  { %1082 = vmatpush.bf16.xpose.msra.mxu0 %v1073_v56 }
 0xaa9   :  { %v1092_v58 = vpop.permute.xlu0 %1091 }
 0xaaa   :  { %1670 = vmatmul.msk.bf16.vlgmr.msra.gmra.mxu0 %vm342_vm4, %v1063_v57  ;;  %1671 = vmatmul.msk.bf16.vlgmr.msra.gmra.mxu1 %vm342_vm4, %v1092_v58 }
 0xab0   :  { %v974_v59 = vpop.f32.mrf.mxu0 }
 0xab1   :  { %v975_v60 = vadd.f32 %v974_v59, %v2227_v0 }
 0xab3   :  { %v997_v61 = vsel %vm381_vm6, %v975_v60, -inf }
 0xab4   :  { %998 = vmax.xlane.f32.xlu2 %v997_v61 }
 0xab8   :  { %v976_v62 = vpop.f32.mrf.mxu0  ;;  %v993_v63 = vpop.f32.mrf.mxu1 }
 0xab9   :  { %v994_v1 = vadd.f32 %v993_v63, %v2227_v0  ;;  %v1765_v62 = vld [vmem:[%s2476_s10 + $0x18] sm:$0xff] }
 0xaba   :  { %1231 = vmatpush.bf16.msrb.mxu0 %v1765_v62  ;;  %v1771_v62 = vld [vmem:[%s2482_s16 + $0x38] sm:$0xff] }
 0xabb   :  { %v1000_v2 = vsel %vm381_vm6, %v994_v1, -inf }
 0xabc   :  { %1001 = vmax.xlane.f32.xlu0 %v1000_v2 }
 0xac0   :  { %v995_v3 = vpop.f32.mrf.mxu1 }
 0xb27   :  { %v1084_v4 = vpop.f32.mrf.mxu0  ;;  %v1113_v5 = vpop.f32.mrf.mxu1 }
 0xb28   :  { %v1085_v6 = vadd.f32 %v1084_v4, %v2227_v0  ;;  %v1114_v7 = vadd.f32 %v1113_v5, %v2227_v0  ;;  %v999_v8 = vpop.xlane.xlu2 %998  ;;  %v1764_v5 = vld [vmem:[%s2476_s10 + $0x10] sm:$0xff]  ;;  %s2012_s10 = smov 128  }
 0xb29   :  { %v1003_v9 = vsub.f32 %v975_v60, %v999_v8  ;;  %1232 = vmatpush.bf16.msrb.mxu0 %v1764_v5 }
 0xb2a   :  { %v1117_v10 = vsel %vm381_vm6, %v1085_v6, -inf  ;;  %v1120_v52 = vsel %vm381_vm6, %v1114_v7, -inf }
 0xb2b   :  { %v1005_v11 = vmul.f32 1.442695, %v1003_v9  ;;  %1118 = vmax.xlane.f32.xlu1 %v1117_v10  ;;  %1121 = vmax.xlane.f32.xlu2 %v1120_v52 }
 0xb2d   :  { %1847 = vpow2.f32 %v1005_v11  ;;  %v1813_v11 = vld [vmem:[%s2477_s11 + $0x1] ss:$0 sm:$0xff]  ;;  %s2013_s11 = smov 8  }
 0xb2f   :  { %v1115_v12 = vpop.f32.mrf.mxu1  ;;  %v1002_v13 = vpop.xlane.xlu0 %1001 }
 0xb30   :  { %v1004_v14 = vsub.f32 %v994_v1, %v1002_v13  ;;  %v1086_v17 = vpop.f32.mrf.mxu0 }
 0xb32   :  { %v1007_v18 = vmul.f32 1.442695, %v1004_v14 }
 0xb33   :  { %v1848_v19 = vpop.eup %1847 }
 0xb34   :  { %1849 = vpow2.f32 %v1007_v18  ;;  %v1009_v20 = vsel %vm381_vm6, %v1848_v19, 0.0 }
 0xb35   :  { %1010 = vadd.xlane.f32.xlu0 %v1009_v20 }
 0xb3a   :  { %v1850_v0 = vpop.eup %1849 }
 0xb3b   :  { %v1012_v21 = vsel %vm381_vm6, %v1850_v0, 0.0 }
 0xb3c   :  { %1013 = vadd.xlane.f32.xlu1 %v1012_v21 }
 0xb55   :  { %1144 = vrot.lane.b32.xlu1 %v1143_v23, %s2009_s23 }
 0xb9e   :  { %v1119_v24 = vpop.xlane.xlu1 %1118  ;;  %v1122_v27 = vpop.xlane.xlu2 %1121 }
 0xb9f   :  { %v1123_v28 = vsub.f32 %v1085_v6, %v1119_v24  ;;  %v1124_v29 = vsub.f32 %v1114_v7, %v1122_v27 }
 0xba1   :  { %v1125_v30 = vmul.f32 1.442695, %v1123_v28  ;;  %v1127_v31 = vmul.f32 1.442695, %v1124_v29 }
 0xba3   :  { %1851 = vpow2.f32 %v1125_v30 }
 0xba4   :  { %1853 = vpow2.f32 %v1127_v31 }
 0xba8   :  { %v1011_v32 = vpop.xlane.xlu0 %1010 }
 0xba9   :  { %v1852_v33 = vpop.eup %1851  ;;  %1855 = vrcp.f32 %v1011_v32 }
 0xbaa   :  { %v1854_v34 = vpop.eup %1853  ;;  %v1129_v36 = vsel %vm381_vm6, %v1852_v33, 0.0 }
 0xbab   :  { %1130 = vadd.xlane.f32.xlu2 %v1129_v36  ;;  %v1132_v35 = vsel %vm381_vm6, %v1854_v34, 0.0  ;;  %v1766_v36 = vld [vmem:[#allocation7 + $0x10] sm:$0xff] }
 0xbac   :  { %1133 = vadd.xlane.f32.xlu0 %v1132_v35 }
 0xbaf   :  { %v1856_v25 = vpop.eup %1855  ;;  %v1014_v38 = vpop.xlane.xlu1 %1013 }
 0xbb0   :  { %v1017_v39 = vmul.f32 %v1856_v25, %v1848_v19  ;;  %1857 = vrcp.f32 %v1014_v38 }
 0xbb2   :  { %v1019_v40 = vpack.c.bf16 %v1017_v39, %v1017_v39 }
 0xbb4   :  { %1668 = vmatmul.msk.bf16.vlgmr.msrb.gmra.mxu2 %vm381_vm6, %v1019_v40 }
 0xbb6   :  { %v1858_v26 = vpop.eup %1857 }
 0xbb7   :  { %v1018_v42 = vmul.f32 %v1858_v26, %v1850_v0 }
 0xbb9   :  { %v1020_v43 = vpack.c.bf16 %v1018_v42, %v1018_v42 }
 0xbbb   :  { %1669 = vmatmul.msk.bf16.vlgmr.msrb.gmra.mxu3 %vm381_vm6, %v1020_v43 }
 0xbc3   :  { %1168 = vrot.lane.b32.xlu2 %v1167_v45, %s2009_s23 }
 0xbc7   :  { %v1145_v46 = vpop.permute.xlu1 %1144 }
 0xbc8   :  { %v1150_v41 = vsel %vm409_vm5, %v1145_v46, 0 }
 0xbc9   :  { %1159 = vmatpush.bf16.msra.mxu2 %v1150_v41 }
 0xbcd   :  { %1387 = vmatpush.bf16.msrb.mxu2 %v1771_v62 }
 0xc1e   :  { %v1131_v48 = vpop.xlane.xlu2 %1130 }
 0xc1f   :  { %v1134_v49 = vpop.xlane.xlu0 %1133  ;;  %1859 = vrcp.f32 %v1131_v48 }
 0xc20   :  { %1861 = vrcp.f32 %v1134_v49 }
 0xc25   :  { %v1860_v50 = vpop.eup %1859 }
 0xc26   :  { %v1862_v51 = vpop.eup %1861  ;;  %v1137_v53 = vmul.f32 %v1860_v50, %v1852_v33  ;;  %v1169_v54 = vpop.permute.xlu2 %1168 }
 0xc27   :  { %v1138_v55 = vmul.f32 %v1862_v51, %v1854_v34  ;;  %v1174_v56 = vsel %vm409_vm5, %v1169_v54, 0  ;;  %v1814_v51 = vld [vmem:[%s2478_s12 + $0x1] ss:$0 sm:$0xff] }
 0xc28   :  { %v1139_v57 = vpack.c.bf16 %v1137_v53, %v1137_v53  ;;  %1183 = vmatpush.bf16.msra.mxu3 %v1174_v56  ;;  %v1815_v56 = vld [vmem:[%s2479_s13 + $0x1] ss:$0 sm:$0xff] }
 0xc29   :  { %v1140_v47 = vpack.c.bf16 %v1138_v55, %v1138_v55 }
 0xc2a   :  { %1672 = vmatmul.msk.bf16.vlgmr.msra.gmra.mxu2 %vm381_vm6, %v1139_v57 }
 0xc2b   :  { %1673 = vmatmul.msk.bf16.vlgmr.msra.gmra.mxu3 %vm381_vm6, %v1140_v47 }
 0xc37   :  { %v1036_v58 = vpop.f32.mrf.mxu2 }
 0xc3e   :  { %v1055_v59 = vpop.f32.mrf.mxu3 }
 0xc3f   :  { %v1038_v60 = vpop.f32.mrf.mxu2 }
 0xc46   :  { %v1057_v61 = vpop.f32.mrf.mxu3 }
 0xcad   :  { %v1161_v63 = vpop.f32.mrf.mxu2 }
 0xcae   :  { %v1185_v1 = vpop.f32.mrf.mxu3 }
 0xcaf   :  { %v1795_v2 = vpack.i.bf16 %v1185_v1, %v1161_v63  ;;  %v1770_v63 = vld [vmem:[%s2482_s16 + $0x30] sm:$0xff]  ;;  %v1769_v1 = vld [vmem:[%s2482_s16 + $0x28] sm:$0xff] }
 0xcb0   :  { %1388 = vmatpush.bf16.msrb.mxu2 %v1770_v63 }
 0xcb1   :  { %1796 = vrot.lane.b32.xlu0 %v1795_v2, %s2005_s5  ;;  %v1768_v2 = vld [vmem:[%s2482_s16 + $0x20] sm:$0xff] }
 0xcb4   :  { %1389 = vmatpush.bf16.msrb.mxu2 %v1769_v1 }
 0xcb5   :  { %v1163_v3 = vpop.f32.mrf.mxu2 }
 0xcb6   :  { %v1187_v4 = vpop.f32.mrf.mxu3 }
 0xcb7   :  { %v1816_v4 = vld [vmem:[%s2481_s15 + $0x1] ss:$0 sm:$0xff] }
 0xcb8   :  { %1390 = vmatpush.bf16.msrb.mxu2 %v1768_v2 }
 0xd23   :  { %v1797_v6 = vpop.permute.xlu0 %1796 }
 0xd24   :  { %v1799_v7 = vunpack.i.h.bf16 %v1797_v6  ;;  %v1798_v8 = vunpack.i.l.bf16 %v1797_v6 }
 0xd26   :  { %v1198_v9 = vsel %vm342_vm4, %v1055_v59, %v1799_v7  ;;  %v1197_v10 = vsel %vm342_vm4, %v1036_v58, %v1798_v8 }
 0xd27   :  { %v1199_v52 = vpack.c.bf16 %v1198_v9, %v1197_v10 }
 0xd29   :  { %1687 = vmatmul.msk.bf16.vlgmr.msrb.gmra.mxu0 %vm250_vm3, %v1199_v52  ;;  %v1817_v52 = vld [vmem:[#allocation8 + $0x1] ss:$0 sm:$0xff] }
 0xda6   :  { %v1234_v12 = vpop.f32.mrf.mxu0 }
 0xda7   :  { %v1235_v13 = vadd.f32 %v1813_v11, %v1234_v12 }
 0xda9   :  { %v1239_v14 = vadd.f32 %v1235_v13, %v2333_v15 }
 0xdab   :  { %v1245_v17 = vsel %vm250_vm3, %v1239_v14, 0.0 }
 0xdac   :  { %1246 = vadd.xlane.f32.xlu0 %v1245_v17 }
 0xdae   :  { %v1236_v18 = vpop.f32.mrf.mxu0 }
 0xdaf   :  { %v1237_v19 = vadd.f32 %v1813_v11, %v1236_v18 }
 0xdb1   :  { %v1240_v20 = vadd.f32 %v1237_v19, %v2335_v16  ;;  %v1767_v16 = vld [vmem:[#allocation7 + $0x18] sm:$0xff] }
 0xdb2   :  { %1331 = vmatpush.bf16.msrb.mxu1 %v1767_v16 }
 0xdb3   :  { %v1248_v0 = vsel %vm250_vm3, %v1240_v20, 0.0 }
 0xdb4   :  { %1249 = vadd.xlane.f32.xlu1 %v1248_v0 }
 0xdb6   :  { %1332 = vmatpush.bf16.msrb.mxu1 %v1766_v36 }
 0xe1f   :  { %v1247_v21 = vpop.xlane.xlu0 %1246 }
 0xe20   :  { %v1251_v22 = vmul.f32 %v1247_v21, %v2270_v37 }
 0xe22   :  { %v1253_v23 = vsub.f32 %v1239_v14, %v1251_v22 }
 0xe24   :  { %v1255_v24 = vmul.f32 %v1253_v23, %v1253_v23 }
 0xe26   :  { %v1257_v27 = vsel %vm250_vm3, %v1255_v24, 0.0 }
 0xe27   :  { %v1250_v28 = vpop.xlane.xlu1 %1249  ;;  %1258 = vadd.xlane.f32.xlu2 %v1257_v27 }
 0xe28   :  { %v1252_v15 = vmul.f32 %v1250_v28, %v2270_v37 }
 0xe2a   :  { %v1254_v29 = vsub.f32 %v1240_v20, %v1252_v15 }
 0xe2c   :  { %v1256_v30 = vmul.f32 %v1254_v29, %v1254_v29 }
 0xe2e   :  { %v1260_v31 = vsel %vm250_vm3, %v1256_v30, 0.0 }
 0xe2f   :  { %1261 = vadd.xlane.f32.xlu0 %v1260_v31  ;;  %v1773_v31 = vld [vmem:[%s2486_s20 + $0x8] sm:$0xff] }
 0xe30   :  { %1487 = vmatpush.bf16.msrb.mxu3 %v1773_v31 }
 0xe9a   :  { %v1259_v32 = vpop.xlane.xlu2 %1258 }
 0xe9b   :  { %v1263_v33 = vmul.f32 %v1259_v32, %v2270_v37 }
 0xe9d   :  { %v1265_v34 = vadd.f32 1e-05, %v1263_v33 }
 0xe9f   :  { %1863 = vrsqrt.f32 %v1265_v34  ;;  %vm1273_vm5 = vweird.f32 %v1265_v34 }
 0xea2   :  { %v1262_v35 = vpop.xlane.xlu0 %1261 }
 0xea3   :  { %v1264_v25 = vmul.f32 %v1262_v35, %v2270_v37 }
 0xea5   :  { %v1864_v38 = vpop.eup %1863  ;;  %v1266_v39 = vadd.f32 1e-05, %v1264_v25 }
 0xea6   :  { %v1268_v40 = vmul.f32 %v1864_v38, %v1265_v34  ;;  %vm1274_vm4 = vweird.f32 %v1864_v38  ;;  %v1772_v34 = vld [vmem:[%s2486_s20] sm:$0xff] }
 0xea7   :  { %1865 = vrsqrt.f32 %v1266_v39  ;;  %vm1275_vm6 = vmor %vm1273_vm5, %vm1274_vm4  ;;  %vm1283_vm10 = vweird.f32 %v1266_v39  ;;  %1488 = vmatpush.bf16.msrb.mxu3 %v1772_v34 }
 0xea8   :  { %v1269_v26 = vmul.f32 %v1864_v38, %v1268_v40 }
 0xeaa   :  { %v1270_v42 = vmul.f32 0.5, %v1269_v26 }
 0xeac   :  { %v1271_v43 = vsub.f32 1.5, %v1270_v42 }
 0xead   :  { %v1866_v44 = vpop.eup %1865 }
 0xeae   :  { %v1272_v45 = vmul.f32 %v1864_v38, %v1271_v43  ;;  %v1278_v46 = vmul.f32 %v1866_v44, %v1266_v39  ;;  %vm1284_vm9 = vweird.f32 %v1866_v44 }
 0xeaf   :  { %vm1285_vm11 = vmor %vm1283_vm10, %vm1284_vm9 }
 0xeb0   :  { %v1279_v41 = vmul.f32 %v1866_v44, %v1278_v46  ;;  %v1276_v48 = vsel %vm1275_vm6, %v1864_v38, %v1272_v45 }
 0xeb1   :  { %v1287_v53 = vmul.f32 %v1276_v48, %v1253_v23 }
 0xeb2   :  { %v1280_v49 = vmul.f32 0.5, %v1279_v41 }
 0xeb3   :  { %v1292_v57 = vmul.f32 %v1814_v51, %v1287_v53 }
 0xeb4   :  { %v1281_v50 = vsub.f32 1.5, %v1280_v49 }
 0xeb5   :  { %v1297_v59 = vadd.f32 %v1815_v56, %v1292_v57 }
 0xeb6   :  { %v1282_v54 = vmul.f32 %v1866_v44, %v1281_v50 }
 0xeb8   :  { %v1286_v55 = vsel %vm1285_vm11, %v1866_v44, %v1282_v54  ;;  %v1819_v54 = vld [vmem:[%s2485_s19 + $0x1] ss:$0 sm:$0xff]  ;;  %s2509_s19 = sld [smem:[#allocation22_spill]] }
 0xeb9   :  { %v1288_v47 = vmul.f32 %v1286_v55, %v1254_v29 }
 0xebb   :  { %v1293_v58 = vmul.f32 %v1814_v51, %v1288_v47 }
 0xebd   :  { %v1298_v60 = vadd.f32 %v1815_v56, %v1293_v58 }
 0xebe   :  { %s1503_s1 = sshll.u32 %s2509_s19, 4  ;;  %s1504_s1 = int_to_ptr.hbm [resolvable:$true] %s1503_s1 }
 0xebf   :  { %v1299_v61 = vpack.c.bf16 %v1298_v60, %v1297_v59 }
 0xec1   :  { %1699 = vmatmul.msk.bf16.vlgmr.msrb.gmra.mxu1 %vm250_vm3, %v1299_v61 }
 0xf3e   :  { %v1334_v3 = vpop.f32.mrf.mxu1 }
 0xf3f   :  { %v1335_v5 = vadd.f32 %v1816_v4, %v1334_v3 }
 0xf41   :  { %v1339_v8 = vmax.f32 %v1335_v5, 0.0 }
 0xf46   :  { %v1336_v6 = vpop.f32.mrf.mxu1 }
 0xf47   :  { %v1337_v7 = vadd.f32 %v1816_v4, %v1336_v6 }
 0xf49   :  { %v1340_v9 = vmax.f32 %v1337_v7, 0.0 }
 0xf4b   :  { %v1341_v10 = vpack.c.bf16 %v1340_v9, %v1339_v8 }
 0xf4d   :  { %1724 = vmatmul.msk.bf16.vlgmr.msrb.gmra.mxu2 %vm765_vm14, %v1341_v10 }
 0xfd0   :  { %v1392_v11 = vpop.f32.mrf.mxu2 }
 0xfd1   :  { %v1393_v12 = vadd.f32 %v1817_v52, %v1392_v11 }
 0xfd3   :  { %v1397_v13 = vadd.f32 %v1393_v12, %v1297_v59 }
 0xfd5   :  { %v1403_v14 = vsel %vm250_vm3, %v1397_v13, 0.0 }
 0xfd6   :  { %1404 = vadd.xlane.f32.xlu1 %v1403_v14 }
 0xfd8   :  { %v1394_v17 = vpop.f32.mrf.mxu2 }
 0xfd9   :  { %v1395_v18 = vadd.f32 %v1817_v52, %v1394_v17 }
 0xfdb   :  { %v1398_v19 = vadd.f32 %v1395_v18, %v1298_v60  ;;  %v1820_v60 = vld [vmem:[%s2487_s21] ss:$0 sm:$0xff] }
 0xfdd   :  { %v1406_v20 = vsel %vm250_vm3, %v1398_v19, 0.0 }
 0xfde   :  { %1407 = vadd.xlane.f32.xlu2 %v1406_v20 }
0x1049   :  { %v1405_v0 = vpop.xlane.xlu1 %1404 }
0x104a   :  { %v1409_v21 = vmul.f32 %v1405_v0, %v2270_v37 }
0x104c   :  { %v1411_v22 = vsub.f32 %v1397_v13, %v1409_v21 }
0x104e   :  { %v1413_v23 = vmul.f32 %v1411_v22, %v1411_v22 }
0x1050   :  { %v1415_v24 = vsel %vm250_vm3, %v1413_v23, 0.0 }
0x1051   :  { %v1408_v27 = vpop.xlane.xlu2 %1407  ;;  %1416 = vadd.xlane.f32.xlu0 %v1415_v24 }
0x1052   :  { %v1410_v28 = vmul.f32 %v1408_v27, %v2270_v37 }
0x1054   :  { %v1412_v15 = vsub.f32 %v1398_v19, %v1410_v28 }
0x1056   :  { %v1414_v29 = vmul.f32 %v1412_v15, %v1412_v15 }
0x1058   :  { %v1418_v30 = vsel %vm250_vm3, %v1414_v29, 0.0 }
0x1059   :  { %1419 = vadd.xlane.f32.xlu1 %v1418_v30 }
0x10c4   :  { %v1417_v16 = vpop.xlane.xlu0 %1416 }
0x10c5   :  { %v1421_v32 = vmul.f32 %v1417_v16, %v2270_v37 }
0x10c7   :  { %v1423_v33 = vadd.f32 1e-05, %v1421_v32 }
0x10c9   :  { %1867 = vrsqrt.f32 %v1423_v33  ;;  %vm1431_vm13 = vweird.f32 %v1423_v33 }
0x10cc   :  { %v1420_v36 = vpop.xlane.xlu1 %1419 }
0x10cd   :  { %v1422_v35 = vmul.f32 %v1420_v36, %v2270_v37  ;;  %v1818_v37 = vld [vmem:[%s2484_s18 + $0x1] ss:$0 sm:$0xff]  ;;  %s2011_s18 = smov [#allocation10]  }
0x10ce   :  { %s1501_s26 = sshll.u32 %s2011_s18, 4  ;;  %s1502_s26 = int_to_ptr.vmem [resolvable:$true] %s1501_s26 }
0x10cf   :  { %v1868_v25 = vpop.eup %1867  ;;  %v1424_v38 = vadd.f32 1e-05, %v1422_v35 }
0x10d0   :  { %v1426_v39 = vmul.f32 %v1868_v25, %v1423_v33  ;;  %vm1432_vm12 = vweird.f32 %v1868_v25 }
0x10d1   :  { %1869 = vrsqrt.f32 %v1424_v38  ;;  %vm1433_vm14 = vmor %vm1431_vm13, %vm1432_vm12  ;;  %vm1441_vm0 = vweird.f32 %v1424_v38 }
0x10d2   :  { %v1427_v40 = vmul.f32 %v1868_v25, %v1426_v39 }
0x10d4   :  { %v1428_v26 = vmul.f32 0.5, %v1427_v40 }
0x10d6   :  { %v1429_v42 = vsub.f32 1.5, %v1428_v26 }
0x10d7   :  { %v1870_v43 = vpop.eup %1869 }
0x10d8   :  { %v1430_v44 = vmul.f32 %v1868_v25, %v1429_v42  ;;  %v1436_v45 = vmul.f32 %v1870_v43, %v1424_v38  ;;  %vm1442_vm15 = vweird.f32 %v1870_v43 }
0x10d9   :  { %vm1443_vm1 = vmor %vm1441_vm0, %vm1442_vm15 }
0x10da   :  { %v1437_v46 = vmul.f32 %v1870_v43, %v1436_v45  ;;  %v1434_v41 = vsel %vm1433_vm14, %v1868_v25, %v1430_v44 }
0x10db   :  { %v1445_v50 = vmul.f32 %v1434_v41, %v1411_v22 }
0x10dc   :  { %v1438_v48 = vmul.f32 0.5, %v1437_v46 }
0x10dd   :  { %v1450_v55 = vmul.f32 %v1818_v37, %v1445_v50 }
0x10de   :  { %v1439_v49 = vsub.f32 1.5, %v1438_v48 }
0x10df   :  { %v1455_v47 = vadd.f32 %v1819_v54, %v1450_v55 }
0x10e0   :  { %v1440_v51 = vmul.f32 %v1870_v43, %v1439_v49 }
0x10e2   :  { %v1444_v53 = vsel %vm1443_vm1, %v1870_v43, %v1440_v51 }
0x10e3   :  { %v1446_v56 = vmul.f32 %v1444_v53, %v1412_v15 }
0x10e5   :  { %v1451_v57 = vmul.f32 %v1818_v37, %v1446_v56 }
0x10e7   :  { %v1456_v58 = vadd.f32 %v1819_v54, %v1451_v57 }
0x10e9   :  { %v1457_v59 = vpack.c.bf16 %v1456_v58, %v1455_v47 }
0x10eb   :  { %1735 = vmatmul.msk.bf16.vlgmr.msrb.gmra.mxu3 %vm250_vm3, %v1457_v59 }
0x116e   :  { %v1490_v61 = vpop.f32.mrf.mxu3 }
0x116f   :  { %v1491_v62 = vadd.f32 %v1820_v60, %v1490_v61 }
0x1171   :  { %1495 = vst [vmem:[#allocation10] sm:$0xff] %v1491_v62 }
0x1176   :  { %v1492_v63 = vpop.f32.mrf.mxu3 }
0x1177   :  { %v1493_v1 = vadd.f32 %v1820_v60, %v1492_v63 }
0x1179   :  { %1496 = vst [vmem:[#allocation10 + $0x8] sm:$0xff] %v1493_v1 }
0x117a   :  { %1509 = dma.vmem_to_hbm [thread:$0]  %s1502_s26, 256, %s1504_s1, [#allocation4], %s2012_s10, %s2012_s10, %s2013_s11  }
0x117b   :  { %1997 = dma.done.wait [#allocation4], 256  }
0x117c   :  { %1998 = vsyncadd [#allocation4], 4294967040 }
0x117d   :  { %1514 = vsyncpa [#allocation3], 1 }
0x117e   :  { %1515 = vsyncpa [#allocation6], 1 }
0x117f   :  { %1516 = vsyncpa [#allocation9], 1 }
0x1180   :  { %1517 = vsyncpa [#allocation4], 1 }

</bundles_post_ra>
